<compile_context>
chip_gen: v7x
topology: tpu7x:2x2x1
jax: 0.10.0
libtpu: 0.0.40
codegen_flags: <defaults>
</compile_context>

<pallas_src>
import math
from functools import partial

import jax
import jax.numpy as jnp
from jax.experimental import pallas as pl
from jax.experimental.pallas import tpu as pltpu


# ----------------------------- kernel ------------------------------------- #
def _cross_aug_kernel(
    q_ref, enc_ref,
    wq_ref, bq_ref, wkv_ref, bkv_ref, wp_ref, bp_ref,
    w1_ref, b1_ref, w2_ref, b2_ref,
    gamma_ref, beta_ref,
    out_ref,
    acc_ref,
    *, num_heads: int, eps: float,
):
    H = num_heads
    Bt, Sq, D = q_ref.shape
    _, Sk, _E = enc_ref.shape
    Dh = D // H
    M = Bt * Sq

    e = pl.program_id(1)

    # Correctness invariant: the encoder axis MUST be the innermost grid axis
    # and marked "arbitrary" (sequential) - the residual carry in acc_ref
    # (re-initialised at e == 0, finalised at e == last) relies on it.
    @pl.when(e == 0)
    def _():
        acc_ref[...] = q_ref[...].reshape(M, D).astype(jnp.float32)

    x = acc_ref[...]                                # (M, D) f32 residual stream
    x_bf = x.astype(jnp.bfloat16)
    enc = enc_ref[...].reshape(Bt * Sk, _E)         # (Bt*Sk, E) bf16 (pre-cast on host)

    gamma = gamma_ref[...]                          # (1, D)
    beta = beta_ref[...]                            # (1, D)

    # ---- projections: wide MXU matmuls (1/sqrt(Dh) folded into wq/bq) ----
    q_proj = jnp.dot(x_bf, wq_ref[...], preferred_element_type=jnp.float32) + bq_ref[...]   # (M, D)
    kv = jnp.dot(enc, wkv_ref[...], preferred_element_type=jnp.float32) + bkv_ref[...]      # (Bt*Sk, 2D)

    # ---- head split: one reshape/transpose into a merged (Bt*H) batch dim ----
    def to_heads(t, S):
        # (Bt*S, H*Dh) f32 -> (Bt*H, S, Dh) bf16
        return (t.astype(jnp.bfloat16)
                 .reshape(Bt, S, H, Dh)
                 .transpose(0, 2, 1, 3)
                 .reshape(Bt * H, S, Dh))

    q_h = to_heads(q_proj, Sq)                      # (Bt*H, Sq, Dh)
    k_h = to_heads(kv[:, :D], Sk)                   # (Bt*H, Sk, Dh)
    v_h = to_heads(kv[:, D:], Sk)                   # (Bt*H, Sk, Dh)

    # ---- attention core, batched over (batch, head): one softmax ----
    scores = jnp.einsum('nqd,nkd->nqk', q_h, k_h,
                        preferred_element_type=jnp.float32)      # (Bt*H, Sq, Sk)
    scores = scores - jnp.max(scores, axis=-1, keepdims=True)
    p = jnp.exp(scores)
    p = p * pl.reciprocal(jnp.sum(p, axis=-1, keepdims=True), approx=True)
    ctx = jnp.einsum('nqk,nkd->nqd', p.astype(jnp.bfloat16), v_h,
                     preferred_element_type=jnp.float32)         # (Bt*H, Sq, Dh)

    # ---- output projection: one relayout back to (M, D), one K=D matmul ----
    ctx_m = (ctx.astype(jnp.bfloat16)
                .reshape(Bt, H, Sq, Dh)
                .transpose(0, 2, 1, 3)
                .reshape(M, D))
    attn_out = jnp.dot(ctx_m, wp_ref[...],
                       preferred_element_type=jnp.float32) + bp_ref[...]   # (M, D)

    def layer_norm(v):
        mu = jnp.mean(v, axis=-1, keepdims=True)
        var = jnp.mean(jnp.square(v - mu), axis=-1, keepdims=True)
        return (v - mu) * jax.lax.rsqrt(var + eps) * gamma + beta

    # residual + norm (1)
    x1 = layer_norm(x + attn_out)

    # ---- MLP (GELU tanh) ----
    h1 = jnp.dot(x1.astype(jnp.bfloat16), w1_ref[...],
                 preferred_element_type=jnp.float32) + b1_ref[...]
    h1 = jax.nn.gelu(h1, approximate=True)
    h2 = jnp.dot(h1.astype(jnp.bfloat16), w2_ref[...],
                 preferred_element_type=jnp.float32) + b2_ref[...]

    # residual + norm (2)
    x2 = layer_norm(x1 + h2)

    acc_ref[...] = x2                               # carry to the next encoder state

    @pl.when(e == pl.num_programs(1) - 1)
    def _():
        out_ref[...] = x2.reshape(Bt, Sq, D).astype(out_ref.dtype)


# ----------------------------- wrapper ------------------------------------ #
def _prepare_params(params, *, num_heads):
    """Host-side one-time weight re-packing: fuse K|V, fold 1/sqrt(head_dim)
    into the query projection, cast matmul weights to bf16 (biases/LN stay f32)."""
    D = params["wq"].shape[0]
    Dh = D // num_heads
    scale = 1.0 / math.sqrt(Dh)
    bf = jnp.bfloat16
    f32 = jnp.float32
    return {
        "wq": (params["wq"] * scale).astype(bf),                                   # (D, D)
        "bq": (params["bq"] * scale).astype(f32),                                  # (1, D)
        "wkv": jnp.concatenate([params["wk"], params["wv"]], axis=1).astype(bf),   # (E, 2D)
        "bkv": jnp.concatenate([params["bk"], params["bv"]], axis=1).astype(f32),  # (1, 2D)
        "wp": params["wp"].astype(bf),                                             # (D, D)
        "bp": params["bp"].astype(f32),
        "w1": params["w1"].astype(bf),
        "b1": params["b1"].astype(f32),
        "w2": params["w2"].astype(bf),
        "b2": params["b2"].astype(f32),
        "gamma": params["gamma"].astype(f32),
        "beta": params["beta"].astype(f32),
    }


def _pick_batch_tile(B, Sq, target_m=128):
    """Largest divisor of B such that Bt*Sq <= target_m (fills the MXU M dim
    when Sq is decode-small)."""
    bt = 1
    for d in range(1, B + 1):
        if B % d == 0 and d * Sq <= target_m:
            bt = d
    return bt


def cross_augmentation(query, encode_hidden_states, params, *, num_heads, eps):
    """Fused CrossAugmentation forward: folds every encoder hidden state into
    the query inside a single pallas_call (grid = (batch_tiles, n_encoder_states))."""
    if not encode_hidden_states:
        return query

    B, Sq, D = query.shape
    assert D % num_heads == 0
    H = num_heads

    # TODO(synk): assumes all encoder hidden states share one (B, Sk, E) shape
    # (true for the reference usage); ragged Sk would need per-state handling.
    enc_stack = jnp.stack(encode_hidden_states, axis=0).astype(jnp.bfloat16)  # (N_enc, B, Sk, E)
    N_enc, _, Sk, E = enc_stack.shape

    p = _prepare_params(params, num_heads=H)
    I = p["w1"].shape[1]

    Bt = _pick_batch_tile(B, Sq)     # fold Bt batch rows into one block
    M = Bt * Sq

    # Weights never change across the grid: single-buffer them (no pointless
    # double-buffering of constant blocks -> halves resident weight VMEM).
    def wspec(shape):
        return pl.BlockSpec(shape, lambda b, e: (0,) * len(shape),
                            pipeline_mode=pl.Buffered(1))

    grid_spec = pltpu.PrefetchScalarGridSpec(
        num_scalar_prefetch=0,
        grid=(B // Bt, N_enc),                       # enc axis LAST (sequential carry)
        in_specs=[
            pl.BlockSpec((Bt, Sq, D), lambda b, e: (b, 0, 0)),             # query
            # Encoder states: only per-step-varying HBM stream (default 2-deep
            # buffering; bump via pl.Buffered(3) if xprof shows exposed DMA).
            pl.BlockSpec((pl.Squeezed(), Bt, Sk, E), lambda b, e: (e, b, 0, 0)),
            wspec((D, D)), wspec((1, D)),                                  # wq, bq
            wspec((E, 2 * D)), wspec((1, 2 * D)),                          # wkv, bkv
            wspec((D, D)), wspec((1, D)),                                  # wp, bp
            wspec((D, I)), wspec((1, I)),                                  # w1, b1
            wspec((I, D)), wspec((1, D)),                                  # w2, b2
            wspec((1, D)), wspec((1, D)),                                  # gamma, beta
        ],
        out_specs=pl.BlockSpec((Bt, Sq, D), lambda b, e: (b, 0, 0)),       # resident over enc axis
        scratch_shapes=[pltpu.VMEM((M, D), jnp.float32)],                  # f32 residual accumulator
    )

    # Explicit VMEM budget: resident weights + pipelined I/O blocks + live
    # activations, x2 headroom, clamped to a cross-chip-safe [32 MiB, 64 MiB].
    bfb, f32b = 2, 4
    weight_bytes = (D * D + E * 2 * D + D * D + D * I + I * D) * bfb \
                   + (6 * D + 2 * D + I) * f32b
    io_bytes = 2 * (2 * Bt * Sq * D * f32b + Bt * Sk * E * bfb)
    act_bytes = (3 * M * D + 2 * Bt * Sk * D + 2 * Bt * H * Sq * Sk + M * I) * f32b
    scratch_bytes = M * D * f32b
    vmem_limit = int(min(64 * 2**20,
                         max(32 * 2**20,
                             2 * (weight_bytes + io_bytes + act_bytes + scratch_bytes))))

    kernel = partial(_cross_aug_kernel, num_heads=H, eps=eps)

    return pl.pallas_call(
        kernel,
        out_shape=jax.ShapeDtypeStruct((B, Sq, D), query.dtype),
        grid_spec=grid_spec,
        compiler_params=pltpu.CompilerParams(
            # batch axis may shard across v7x's 2 TCs; enc axis MUST stay
            # "arbitrary" (residual carry in the scratch accumulator).
            dimension_semantics=("parallel", "arbitrary"),
            vmem_limit_bytes=vmem_limit,
        ),
    )(
        query, enc_stack,
        p["wq"], p["bq"], p["wkv"], p["bkv"], p["wp"], p["bp"],
        p["w1"], p["b1"], p["w2"], p["b2"], p["gamma"], p["beta"],
    )


# ------------------------ pure-JAX reference (f32) -------------------------- #
def _reference(query, enc_list, params, *, num_heads, eps):
    H = num_heads
    D = params["wq"].shape[0]
    Dh = D // H

    def layer_norm(v):
        mu = v.mean(-1, keepdims=True)
        var = ((v - mu) ** 2).mean(-1, keepdims=True)
        return (v - mu) / jnp.sqrt(var + eps) * params["gamma"] + params["beta"]

    def split(t):                                  # (B, S, D) -> (B, H, S, Dh)
        Bt, St, _ = t.shape
        return t.reshape(Bt, St, H, Dh).transpose(0, 2, 1, 3)

    x = query
    for enc in enc_list:
        Q = x @ params["wq"] + params["bq"]
        K = enc @ params["wk"] + params["bk"]
        V = enc @ params["wv"] + params["bv"]
        s = jnp.einsum('bhqd,bhkd->bhqk', split(Q), split(K)) / math.sqrt(Dh)
        pr = jax.nn.softmax(s, axis=-1)
        ctx = jnp.einsum('bhqk,bhkd->bhqd', pr, split(V))
        ctx = ctx.transpose(0, 2, 1, 3).reshape(x.shape)
        attn = ctx @ params["wp"] + params["bp"]
        x = layer_norm(x + attn)
        h = jax.nn.gelu(x @ params["w1"] + params["b1"], approximate=True)
        h = h @ params["w2"] + params["b2"]
        x = layer_norm(x + h)
    return x


# ------------------------ deterministic parameter init --------------------- #
def init_params(key, hidden, enc_hidden, projection_scale):
    inter = int(hidden * projection_scale)
    keys = jax.random.split(key, 12)
    s = 0.02

    def lin(k, fan_in, fan_out):
        return s * jax.random.normal(k, (fan_in, fan_out), jnp.float32)

    return {
        "wq": lin(keys[0], hidden, hidden),
        "bq": s * jax.random.normal(keys[1], (1, hidden), jnp.float32),
        "wk": lin(keys[2], enc_hidden, hidden),
        "bk": s * jax.random.normal(keys[3], (1, hidden), jnp.float32),
        "wv": lin(keys[4], enc_hidden, hidden),
        "bv": s * jax.random.normal(keys[5], (1, hidden), jnp.float32),
        "wp": lin(keys[6], hidden, hidden),
        "bp": s * jax.random.normal(keys[7], (1, hidden), jnp.float32),
        "w1": lin(keys[8], hidden, inter),
        "b1": s * jax.random.normal(keys[9], (1, inter), jnp.float32),
        "w2": lin(keys[10], inter, hidden),
        "b2": s * jax.random.normal(keys[11], (1, hidden), jnp.float32),
        "gamma": jnp.ones((1, hidden), jnp.float32),
        "beta": jnp.zeros((1, hidden), jnp.float32),
    }


# --------------------------------- main ------------------------------------ #
if __name__ == "__main__":
    B, Sq, Sk = 2, 8, 16
    hidden, enc_hidden = 32, 48
    num_heads = 4
    projection_scale = 2
    layer_norm_eps = 1e-5
    # dropout = 0.1 -> eval mode, no-op

    key = jax.random.PRNGKey(0)
    k_q, k_e1, k_e2, k_p = jax.random.split(key, 4)

    query = jax.random.normal(k_q, (B, Sq, hidden), jnp.float32)
    encode_hidden_states = [
        jax.random.normal(k_e1, (B, Sk, enc_hidden), jnp.float32),
        jax.random.normal(k_e2, (B, Sk, enc_hidden), jnp.float32),
    ]
    params = init_params(k_p, hidden, enc_hidden, projection_scale)

    out = cross_augmentation(
        query, encode_hidden_states, params,
        num_heads=num_heads, eps=layer_norm_eps,
    )
    out = jax.block_until_ready(out)

    ref = _reference(query, encode_hidden_states, params,
                     num_heads=num_heads, eps=layer_norm_eps)

    assert out.shape == (B, Sq, hidden)
    assert jnp.all(jnp.isfinite(out))
    # bf16 matmuls + approx reciprocal vs f32 reference: generous tolerance.
    assert jnp.allclose(out, ref, atol=5e-2, rtol=5e-2)
    print("KERNEL_OK")
</pallas_src>

<mosaic_0001>
module attributes {stable_mosaic.version = 11 : i64} {
  func.func @_cross_aug_kernel(%arg0: i32, %arg1: i32, %arg2: memref<2x8x32xf32, #tpu.memory_space<vmem>>, %arg3: memref<1x2x16x48xbf16, #tpu.memory_space<vmem>>, %arg4: memref<32x32xbf16, #tpu.memory_space<vmem>>, %arg5: memref<1x32xf32, #tpu.memory_space<vmem>>, %arg6: memref<48x64xbf16, #tpu.memory_space<vmem>>, %arg7: memref<1x64xf32, #tpu.memory_space<vmem>>, %arg8: memref<32x32xbf16, #tpu.memory_space<vmem>>, %arg9: memref<1x32xf32, #tpu.memory_space<vmem>>, %arg10: memref<32x64xbf16, #tpu.memory_space<vmem>>, %arg11: memref<1x64xf32, #tpu.memory_space<vmem>>, %arg12: memref<64x32xbf16, #tpu.memory_space<vmem>>, %arg13: memref<1x32xf32, #tpu.memory_space<vmem>>, %arg14: memref<1x32xf32, #tpu.memory_space<vmem>>, %arg15: memref<1x32xf32, #tpu.memory_space<vmem>>, %arg16: memref<2x8x32xf32, #tpu.memory_space<vmem>>, %arg17: memref<16x32xf32, #tpu.memory_space<vmem>>) attributes {dimension_semantics = [#tpu.dimension_semantics<parallel>, #tpu.dimension_semantics<arbitrary>], iteration_bounds = array<i64: 1, 2>, scalar_prefetch = 0 : i64, scratch_operands = 1 : i64, tpu.core_type = #tpu.core_type<tc>, window_params = [{transform_indices = @transform_0, window_bounds = array<i64: 2, 8, 32>}, {transform_indices = @transform_1, window_bounds = array<i64: 1, 2, 16, 48>}, {pipeline_mode = #tpu.pipeline_mode<synchronous>, transform_indices = @transform_2, window_bounds = array<i64: 32, 32>}, {pipeline_mode = #tpu.pipeline_mode<synchronous>, transform_indices = @transform_3, window_bounds = array<i64: 1, 32>}, {pipeline_mode = #tpu.pipeline_mode<synchronous>, transform_indices = @transform_4, window_bounds = array<i64: 48, 64>}, {pipeline_mode = #tpu.pipeline_mode<synchronous>, transform_indices = @transform_5, window_bounds = array<i64: 1, 64>}, {pipeline_mode = #tpu.pipeline_mode<synchronous>, transform_indices = @transform_6, window_bounds = array<i64: 32, 32>}, {pipeline_mode = #tpu.pipeline_mode<synchronous>, transform_indices = @transform_7, window_bounds = array<i64: 1, 32>}, {pipeline_mode = #tpu.pipeline_mode<synchronous>, transform_indices = @transform_8, window_bounds = array<i64: 32, 64>}, {pipeline_mode = #tpu.pipeline_mode<synchronous>, transform_indices = @transform_9, window_bounds = array<i64: 1, 64>}, {pipeline_mode = #tpu.pipeline_mode<synchronous>, transform_indices = @transform_10, window_bounds = array<i64: 64, 32>}, {pipeline_mode = #tpu.pipeline_mode<synchronous>, transform_indices = @transform_11, window_bounds = array<i64: 1, 32>}, {pipeline_mode = #tpu.pipeline_mode<synchronous>, transform_indices = @transform_12, window_bounds = array<i64: 1, 32>}, {pipeline_mode = #tpu.pipeline_mode<synchronous>, transform_indices = @transform_13, window_bounds = array<i64: 1, 32>}, {transform_indices = @transform_14, window_bounds = array<i64: 2, 8, 32>}]} {
    %c0_i32 = arith.constant 0 : i32
    %0 = arith.cmpi eq, %arg1, %c0_i32 : i32
    %1 = arith.extui %0 : i1 to i32
    %c0_i32_0 = arith.constant 0 : i32
    %2 = arith.cmpi ne, %1, %c0_i32_0 : i32
    scf.if %2 {
      %c0_55 = arith.constant 0 : index
      %c0_56 = arith.constant 0 : index
      %c0_57 = arith.constant 0 : index
      %131 = vector.load %arg2[%c0_55, %c0_56, %c0_57] : memref<2x8x32xf32, #tpu.memory_space<vmem>>, vector<2x8x32xf32>
      %132 = vector.shape_cast %131 : vector<2x8x32xf32> to vector<16x32xf32>
      %c0_58 = arith.constant 0 : index
      %c0_59 = arith.constant 0 : index
      %133 = vector.load %arg17[%c0_58, %c0_59] : memref<16x32xf32, #tpu.memory_space<vmem>>, vector<16x32xf32>
      tpu.vector_store %arg17[%c0_58, %c0_59], %132 {strides = array<i32>} : memref<16x32xf32, #tpu.memory_space<vmem>>, vector<16x32xf32>,
    } else {
    }
    %c0 = arith.constant 0 : index
    %c0_1 = arith.constant 0 : index
    %3 = vector.load %arg17[%c0, %c0_1] : memref<16x32xf32, #tpu.memory_space<vmem>>, vector<16x32xf32>
    %4 = arith.truncf %3 : vector<16x32xf32> to vector<16x32xbf16>
    %c0_2 = arith.constant 0 : index
    %c0_3 = arith.constant 0 : index
    %c0_4 = arith.constant 0 : index
    %c0_5 = arith.constant 0 : index
    %5 = vector.load %arg3[%c0_2, %c0_3, %c0_4, %c0_5] : memref<1x2x16x48xbf16, #tpu.memory_space<vmem>>, vector<1x2x16x48xbf16>
    %6 = vector.shape_cast %5 : vector<1x2x16x48xbf16> to vector<2x16x48xbf16>
    %7 = vector.shape_cast %6 : vector<2x16x48xbf16> to vector<32x48xbf16>
    %c0_6 = arith.constant 0 : index
    %c0_7 = arith.constant 0 : index
    %8 = vector.load %arg14[%c0_6, %c0_7] : memref<1x32xf32, #tpu.memory_space<vmem>>, vector<1x32xf32>
    %c0_8 = arith.constant 0 : index
    %c0_9 = arith.constant 0 : index
    %9 = vector.load %arg15[%c0_8, %c0_9] : memref<1x32xf32, #tpu.memory_space<vmem>>, vector<1x32xf32>
    %c0_10 = arith.constant 0 : index
    %c0_11 = arith.constant 0 : index
    %10 = vector.load %arg4[%c0_10, %c0_11] : memref<32x32xbf16, #tpu.memory_space<vmem>>, vector<32x32xbf16>
    %cst = arith.constant dense<0.000000e+00> : vector<16x32xf32>
    %11 = tpu.matmul %4, %10, %cst {dimension_numbers = #tpu.dot_dimension_numbers<[1], [0], [0], [1], [0, 0, 1, 1], [], []>} : vector<16x32xbf16>, vector<32x32xbf16>, vector<16x32xf32> -> vector<16x32xf32>
    %c0_12 = arith.constant 0 : index
    %c0_13 = arith.constant 0 : index
    %12 = vector.load %arg5[%c0_12, %c0_13] : memref<1x32xf32, #tpu.memory_space<vmem>>, vector<1x32xf32>
    %13 = vector.broadcast %12 : vector<1x32xf32> to vector<16x32xf32>
    %14 = arith.addf %11, %13 : vector<16x32xf32>
    %c0_14 = arith.constant 0 : index
    %c0_15 = arith.constant 0 : index
    %15 = vector.load %arg6[%c0_14, %c0_15] : memref<48x64xbf16, #tpu.memory_space<vmem>>, vector<48x64xbf16>
    %cst_16 = arith.constant dense<0.000000e+00> : vector<32x64xf32>
    %16 = tpu.matmul %7, %15, %cst_16 {dimension_numbers = #tpu.dot_dimension_numbers<[1], [0], [0], [1], [0, 0, 1, 1], [], []>} : vector<32x48xbf16>, vector<48x64xbf16>, vector<32x64xf32> -> vector<32x64xf32>
    %c0_17 = arith.constant 0 : index
    %c0_18 = arith.constant 0 : index
    %17 = vector.load %arg7[%c0_17, %c0_18] : memref<1x64xf32, #tpu.memory_space<vmem>>, vector<1x64xf32>
    %18 = vector.broadcast %17 : vector<1x64xf32> to vector<32x64xf32>
    %19 = arith.addf %16, %18 : vector<32x64xf32>
    %20 = arith.truncf %14 : vector<16x32xf32> to vector<16x32xbf16>
    %21 = vector.shape_cast %20 : vector<16x32xbf16> to vector<2x8x4x8xbf16>
    %22 = tpu.transpose %21, [0, 2, 1, 3] : vector<2x8x4x8xbf16> -> vector<2x4x8x8xbf16>
    %23 = vector.shape_cast %22 : vector<2x4x8x8xbf16> to vector<8x8x8xbf16>
    %24 = vector.extract_strided_slice %19 {offsets = [0, 0], sizes = [32, 32], strides = [1, 1]} : vector<32x64xf32> to vector<32x32xf32>
    %25 = arith.truncf %24 : vector<32x32xf32> to vector<32x32xbf16>
    %26 = vector.shape_cast %25 : vector<32x32xbf16> to vector<2x16x4x8xbf16>
    %27 = tpu.transpose %26, [0, 2, 1, 3] : vector<2x16x4x8xbf16> -> vector<2x4x16x8xbf16>
    %28 = vector.shape_cast %27 : vector<2x4x16x8xbf16> to vector<8x16x8xbf16>
    %29 = vector.extract_strided_slice %19 {offsets = [0, 32], sizes = [32, 32], strides = [1, 1]} : vector<32x64xf32> to vector<32x32xf32>
    %30 = arith.truncf %29 : vector<32x32xf32> to vector<32x32xbf16>
    %31 = vector.shape_cast %30 : vector<32x32xbf16> to vector<2x16x4x8xbf16>
    %32 = tpu.transpose %31, [0, 2, 1, 3] : vector<2x16x4x8xbf16> -> vector<2x4x16x8xbf16>
    %33 = vector.shape_cast %32 : vector<2x4x16x8xbf16> to vector<8x16x8xbf16>
    "tpu.trace_start"() <{level = 10 : i32, message = "nqd,nkd->nqk"}> : () -> ()
    %cst_19 = arith.constant dense<0.000000e+00> : vector<8x8x16xf32>
    %34 = tpu.matmul %23, %28, %cst_19 {dimension_numbers = #tpu.dot_dimension_numbers<[2], [2], [1], [1], [0, 0, 0, 1, 1, 1], [0], [0]>} : vector<8x8x8xbf16>, vector<8x16x8xbf16>, vector<8x8x16xf32> -> vector<8x8x16xf32>
    "tpu.trace_stop"() : () -> ()
    %cst_20 = arith.constant dense<0xFF800000> : vector<8x8xf32>
    %35 = vector.multi_reduction <maximumf>, %34, %cst_20 [2] : vector<8x8x16xf32> to vector<8x8xf32>
    %36 = vector.shape_cast %35 : vector<8x8xf32> to vector<8x8x1xf32>
    %37 = vector.broadcast %36 : vector<8x8x1xf32> to vector<8x8x16xf32>
    %38 = arith.subf %34, %37 : vector<8x8x16xf32>
    %39 = math.exp %38 : vector<8x8x16xf32>
    %cst_21 = arith.constant dense<0.000000e+00> : vector<8x8xf32>
    %40 = vector.multi_reduction <add>, %39, %cst_21 [2] : vector<8x8x16xf32> to vector<8x8xf32>
    %41 = vector.shape_cast %40 : vector<8x8xf32> to vector<8x8x1xf32>
    %42 = tpu.reciprocal %41 {approx = true} : vector<8x8x1xf32> -> vector<8x8x1xf32>
    %43 = vector.broadcast %42 : vector<8x8x1xf32> to vector<8x8x16xf32>
    %44 = arith.mulf %39, %43 : vector<8x8x16xf32>
    %45 = arith.truncf %44 : vector<8x8x16xf32> to vector<8x8x16xbf16>
    "tpu.trace_start"() <{level = 10 : i32, message = "nqk,nkd->nqd"}> : () -> ()
    %cst_22 = arith.constant dense<0.000000e+00> : vector<8x8x8xf32>
    %46 = tpu.matmul %45, %33, %cst_22 {dimension_numbers = #tpu.dot_dimension_numbers<[2], [1], [1], [2], [0, 0, 0, 1, 1, 2], [0], [0]>} : vector<8x8x16xbf16>, vector<8x16x8xbf16>, vector<8x8x8xf32> -> vector<8x8x8xf32>
    "tpu.trace_stop"() : () -> ()
    %47 = arith.truncf %46 : vector<8x8x8xf32> to vector<8x8x8xbf16>
    %48 = vector.shape_cast %47 : vector<8x8x8xbf16> to vector<2x4x8x8xbf16>
    %49 = tpu.transpose %48, [0, 2, 1, 3] : vector<2x4x8x8xbf16> -> vector<2x8x4x8xbf16>
    %50 = vector.shape_cast %49 : vector<2x8x4x8xbf16> to vector<16x32xbf16>
    %c0_23 = arith.constant 0 : index
    %c0_24 = arith.constant 0 : index
    %51 = vector.load %arg8[%c0_23, %c0_24] : memref<32x32xbf16, #tpu.memory_space<vmem>>, vector<32x32xbf16>
    %cst_25 = arith.constant dense<0.000000e+00> : vector<16x32xf32>
    %52 = tpu.matmul %50, %51, %cst_25 {dimension_numbers = #tpu.dot_dimension_numbers<[1], [0], [0], [1], [0, 0, 1, 1], [], []>} : vector<16x32xbf16>, vector<32x32xbf16>, vector<16x32xf32> -> vector<16x32xf32>
    %c0_26 = arith.constant 0 : index
    %c0_27 = arith.constant 0 : index
    %53 = vector.load %arg9[%c0_26, %c0_27] : memref<1x32xf32, #tpu.memory_space<vmem>>, vector<1x32xf32>
    %54 = vector.broadcast %53 : vector<1x32xf32> to vector<16x32xf32>
    %55 = arith.addf %52, %54 : vector<16x32xf32>
    %56 = arith.addf %3, %55 : vector<16x32xf32>
    %cst_28 = arith.constant dense<0.000000e+00> : vector<16xf32>
    %57 = vector.multi_reduction <add>, %56, %cst_28 [1] : vector<16x32xf32> to vector<16xf32>
    %58 = vector.shape_cast %57 : vector<16xf32> to vector<16x1xf32>
    %cst_29 = arith.constant 3.200000e+01 : f32
    %59 = vector.broadcast %cst_29 : f32 to vector<16x1xf32>
    %60 = arith.divf %58, %59 : vector<16x1xf32>
    %61 = vector.broadcast %60 : vector<16x1xf32> to vector<16x32xf32>
    %62 = arith.subf %56, %61 : vector<16x32xf32>
    %63 = arith.mulf %62, %62 : vector<16x32xf32>
    %cst_30 = arith.constant dense<0.000000e+00> : vector<16xf32>
    %64 = vector.multi_reduction <add>, %63, %cst_30 [1] : vector<16x32xf32> to vector<16xf32>
    %65 = vector.shape_cast %64 : vector<16xf32> to vector<16x1xf32>
    %cst_31 = arith.constant 3.200000e+01 : f32
    %66 = vector.broadcast %cst_31 : f32 to vector<16x1xf32>
    %67 = arith.divf %65, %66 : vector<16x1xf32>
    %68 = vector.broadcast %60 : vector<16x1xf32> to vector<16x32xf32>
    %69 = arith.subf %56, %68 : vector<16x32xf32>
    %cst_32 = arith.constant 9.99999974E-6 : f32
    %70 = vector.broadcast %cst_32 : f32 to vector<16x1xf32>
    %71 = arith.addf %67, %70 : vector<16x1xf32>
    %72 = math.rsqrt %71 : vector<16x1xf32>
    %73 = vector.broadcast %72 : vector<16x1xf32> to vector<16x32xf32>
    %74 = arith.mulf %69, %73 : vector<16x32xf32>
    %75 = vector.broadcast %8 : vector<1x32xf32> to vector<16x32xf32>
    %76 = arith.mulf %74, %75 : vector<16x32xf32>
    %77 = vector.broadcast %9 : vector<1x32xf32> to vector<16x32xf32>
    %78 = arith.addf %76, %77 : vector<16x32xf32>
    %79 = arith.truncf %78 : vector<16x32xf32> to vector<16x32xbf16>
    %c0_33 = arith.constant 0 : index
    %c0_34 = arith.constant 0 : index
    %80 = vector.load %arg10[%c0_33, %c0_34] : memref<32x64xbf16, #tpu.memory_space<vmem>>, vector<32x64xbf16>
    %cst_35 = arith.constant dense<0.000000e+00> : vector<16x64xf32>
    %81 = tpu.matmul %79, %80, %cst_35 {dimension_numbers = #tpu.dot_dimension_numbers<[1], [0], [0], [1], [0, 0, 1, 1], [], []>} : vector<16x32xbf16>, vector<32x64xbf16>, vector<16x64xf32> -> vector<16x64xf32>
    %c0_36 = arith.constant 0 : index
    %c0_37 = arith.constant 0 : index
    %82 = vector.load %arg11[%c0_36, %c0_37] : memref<1x64xf32, #tpu.memory_space<vmem>>, vector<1x64xf32>
    %83 = vector.broadcast %82 : vector<1x64xf32> to vector<16x64xf32>
    %84 = arith.addf %81, %83 : vector<16x64xf32>
    %85 = arith.mulf %84, %84 : vector<16x64xf32>
    %86 = arith.mulf %84, %85 : vector<16x64xf32>
    %cst_38 = arith.constant 4.471500e-02 : f32
    %87 = vector.broadcast %cst_38 : f32 to vector<16x64xf32>
    %88 = arith.mulf %87, %86 : vector<16x64xf32>
    %89 = arith.addf %84, %88 : vector<16x64xf32>
    %cst_39 = arith.constant 0.797884583 : f32
    %90 = vector.broadcast %cst_39 : f32 to vector<16x64xf32>
    %91 = arith.mulf %90, %89 : vector<16x64xf32>
    %92 = math.tanh %91 : vector<16x64xf32>
    %cst_40 = arith.constant 1.000000e+00 : f32
    %93 = vector.broadcast %cst_40 : f32 to vector<16x64xf32>
    %94 = arith.addf %93, %92 : vector<16x64xf32>
    %cst_41 = arith.constant 5.000000e-01 : f32
    %95 = vector.broadcast %cst_41 : f32 to vector<16x64xf32>
    %96 = arith.mulf %95, %94 : vector<16x64xf32>
    %97 = arith.mulf %84, %96 : vector<16x64xf32>
    %98 = arith.truncf %97 : vector<16x64xf32> to vector<16x64xbf16>
    %c0_42 = arith.constant 0 : index
    %c0_43 = arith.constant 0 : index
    %99 = vector.load %arg12[%c0_42, %c0_43] : memref<64x32xbf16, #tpu.memory_space<vmem>>, vector<64x32xbf16>
    %cst_44 = arith.constant dense<0.000000e+00> : vector<16x32xf32>
    %100 = tpu.matmul %98, %99, %cst_44 {dimension_numbers = #tpu.dot_dimension_numbers<[1], [0], [0], [1], [0, 0, 1, 1], [], []>} : vector<16x64xbf16>, vector<64x32xbf16>, vector<16x32xf32> -> vector<16x32xf32>
    %c0_45 = arith.constant 0 : index
    %c0_46 = arith.constant 0 : index
    %101 = vector.load %arg13[%c0_45, %c0_46] : memref<1x32xf32, #tpu.memory_space<vmem>>, vector<1x32xf32>
    %102 = vector.broadcast %101 : vector<1x32xf32> to vector<16x32xf32>
    %103 = arith.addf %100, %102 : vector<16x32xf32>
    %104 = arith.addf %78, %103 : vector<16x32xf32>
    %cst_47 = arith.constant dense<0.000000e+00> : vector<16xf32>
    %105 = vector.multi_reduction <add>, %104, %cst_47 [1] : vector<16x32xf32> to vector<16xf32>
    %106 = vector.shape_cast %105 : vector<16xf32> to vector<16x1xf32>
    %cst_48 = arith.constant 3.200000e+01 : f32
    %107 = vector.broadcast %cst_48 : f32 to vector<16x1xf32>
    %108 = arith.divf %106, %107 : vector<16x1xf32>
    %109 = vector.broadcast %108 : vector<16x1xf32> to vector<16x32xf32>
    %110 = arith.subf %104, %109 : vector<16x32xf32>
    %111 = arith.mulf %110, %110 : vector<16x32xf32>
    %cst_49 = arith.constant dense<0.000000e+00> : vector<16xf32>
    %112 = vector.multi_reduction <add>, %111, %cst_49 [1] : vector<16x32xf32> to vector<16xf32>
    %113 = vector.shape_cast %112 : vector<16xf32> to vector<16x1xf32>
    %cst_50 = arith.constant 3.200000e+01 : f32
    %114 = vector.broadcast %cst_50 : f32 to vector<16x1xf32>
    %115 = arith.divf %113, %114 : vector<16x1xf32>
    %116 = vector.broadcast %108 : vector<16x1xf32> to vector<16x32xf32>
    %117 = arith.subf %104, %116 : vector<16x32xf32>
    %cst_51 = arith.constant 9.99999974E-6 : f32
    %118 = vector.broadcast %cst_51 : f32 to vector<16x1xf32>
    %119 = arith.addf %115, %118 : vector<16x1xf32>
    %120 = math.rsqrt %119 : vector<16x1xf32>
    %121 = vector.broadcast %120 : vector<16x1xf32> to vector<16x32xf32>
    %122 = arith.mulf %117, %121 : vector<16x32xf32>
    %123 = vector.broadcast %8 : vector<1x32xf32> to vector<16x32xf32>
    %124 = arith.mulf %122, %123 : vector<16x32xf32>
    %125 = vector.broadcast %9 : vector<1x32xf32> to vector<16x32xf32>
    %126 = arith.addf %124, %125 : vector<16x32xf32>
    %c0_52 = arith.constant 0 : index
    %c0_53 = arith.constant 0 : index
    %127 = vector.load %arg17[%c0_52, %c0_53] : memref<16x32xf32, #tpu.memory_space<vmem>>, vector<16x32xf32>
    tpu.vector_store %arg17[%c0_52, %c0_53], %126 {strides = array<i32>} : memref<16x32xf32, #tpu.memory_space<vmem>>, vector<16x32xf32>,
    %c1_i32 = arith.constant 1 : i32
    %128 = arith.cmpi eq, %arg1, %c1_i32 : i32
    %129 = arith.extui %128 : i1 to i32
    %c0_i32_54 = arith.constant 0 : i32
    %130 = arith.cmpi ne, %129, %c0_i32_54 : i32
    scf.if %130 {
      %131 = vector.shape_cast %126 : vector<16x32xf32> to vector<2x8x32xf32>
      %c0_55 = arith.constant 0 : index
      %c0_56 = arith.constant 0 : index
      %c0_57 = arith.constant 0 : index
      %132 = vector.load %arg16[%c0_55, %c0_56, %c0_57] : memref<2x8x32xf32, #tpu.memory_space<vmem>>, vector<2x8x32xf32>
      tpu.vector_store %arg16[%c0_55, %c0_56, %c0_57], %131 {strides = array<i32>} : memref<2x8x32xf32, #tpu.memory_space<vmem>>, vector<2x8x32xf32>,
    } else {
    }
    return
  }
  func.func @transform_0(%arg0: i32, %arg1: i32) -> (i32, i32, i32) {
    %c0_i32 = arith.constant 0 : i32
    %c0_i32_0 = arith.constant 0 : i32
    %c0_i32_1 = arith.constant 0 : i32
    return %arg0, %c0_i32, %c0_i32_0 : i32, i32, i32
  }
  func.func @transform_1(%arg0: i32, %arg1: i32) -> (i32, i32, i32, i32) {
    %c0_i32 = arith.constant 0 : i32
    %c0_i32_0 = arith.constant 0 : i32
    %c0_i32_1 = arith.constant 0 : i32
    return %arg1, %arg0, %c0_i32, %c0_i32_0 : i32, i32, i32, i32
  }
  func.func @transform_2(%arg0: i32, %arg1: i32) -> (i32, i32) {
    %c0_i32 = arith.constant 0 : i32
    %c0_i32_0 = arith.constant 0 : i32
    %c0_i32_1 = arith.constant 0 : i32
    return %c0_i32, %c0_i32_0 : i32, i32
  }
  func.func @transform_3(%arg0: i32, %arg1: i32) -> (i32, i32) {
    %c0_i32 = arith.constant 0 : i32
    %c0_i32_0 = arith.constant 0 : i32
    %c0_i32_1 = arith.constant 0 : i32
    return %c0_i32, %c0_i32_0 : i32, i32
  }
  func.func @transform_4(%arg0: i32, %arg1: i32) -> (i32, i32) {
    %c0_i32 = arith.constant 0 : i32
    %c0_i32_0 = arith.constant 0 : i32
    %c0_i32_1 = arith.constant 0 : i32
    return %c0_i32, %c0_i32_0 : i32, i32
  }
  func.func @transform_5(%arg0: i32, %arg1: i32) -> (i32, i32) {
    %c0_i32 = arith.constant 0 : i32
    %c0_i32_0 = arith.constant 0 : i32
    %c0_i32_1 = arith.constant 0 : i32
    return %c0_i32, %c0_i32_0 : i32, i32
  }
  func.func @transform_6(%arg0: i32, %arg1: i32) -> (i32, i32) {
    %c0_i32 = arith.constant 0 : i32
    %c0_i32_0 = arith.constant 0 : i32
    %c0_i32_1 = arith.constant 0 : i32
    return %c0_i32, %c0_i32_0 : i32, i32
  }
  func.func @transform_7(%arg0: i32, %arg1: i32) -> (i32, i32) {
    %c0_i32 = arith.constant 0 : i32
    %c0_i32_0 = arith.constant 0 : i32
    %c0_i32_1 = arith.constant 0 : i32
    return %c0_i32, %c0_i32_0 : i32, i32
  }
  func.func @transform_8(%arg0: i32, %arg1: i32) -> (i32, i32) {
    %c0_i32 = arith.constant 0 : i32
    %c0_i32_0 = arith.constant 0 : i32
    %c0_i32_1 = arith.constant 0 : i32
    return %c0_i32, %c0_i32_0 : i32, i32
  }
  func.func @transform_9(%arg0: i32, %arg1: i32) -> (i32, i32) {
    %c0_i32 = arith.constant 0 : i32
    %c0_i32_0 = arith.constant 0 : i32
    %c0_i32_1 = arith.constant 0 : i32
    return %c0_i32, %c0_i32_0 : i32, i32
  }
  func.func @transform_10(%arg0: i32, %arg1: i32) -> (i32, i32) {
    %c0_i32 = arith.constant 0 : i32
    %c0_i32_0 = arith.constant 0 : i32
    %c0_i32_1 = arith.constant 0 : i32
    return %c0_i32, %c0_i32_0 : i32, i32
  }
  func.func @transform_11(%arg0: i32, %arg1: i32) -> (i32, i32) {
    %c0_i32 = arith.constant 0 : i32
    %c0_i32_0 = arith.constant 0 : i32
    %c0_i32_1 = arith.constant 0 : i32
    return %c0_i32, %c0_i32_0 : i32, i32
  }
  func.func @transform_12(%arg0: i32, %arg1: i32) -> (i32, i32) {
    %c0_i32 = arith.constant 0 : i32
    %c0_i32_0 = arith.constant 0 : i32
    %c0_i32_1 = arith.constant 0 : i32
    return %c0_i32, %c0_i32_0 : i32, i32
  }
  func.func @transform_13(%arg0: i32, %arg1: i32) -> (i32, i32) {
    %c0_i32 = arith.constant 0 : i32
    %c0_i32_0 = arith.constant 0 : i32
    %c0_i32_1 = arith.constant 0 : i32
    return %c0_i32, %c0_i32_0 : i32, i32
  }
  func.func @transform_14(%arg0: i32, %arg1: i32) -> (i32, i32, i32) {
    %c0_i32 = arith.constant 0 : i32
    %c0_i32_0 = arith.constant 0 : i32
    %c0_i32_1 = arith.constant 0 : i32
    return %arg0, %c0_i32, %c0_i32_0 : i32, i32, i32
  }
}

</mosaic_0001>

<bundles_post_ra>
// kernel: tpu_custom_call.1
= control target key start
LH: loop header
LB: loop body
LE: loop exit
PB: predicated region body
PF: predicated region fallthrough
CT: control target
= control target key end

     0   :  { %s5111_s0 = inlined_call_operand.hbm [shape: f32[2,8,32], index: 0, kind: input, shape index: {}]   ;;  %s5112_s1 = inlined_call_operand.vmem [shape: bf16[2,2,16,48], index: 1, kind: input, shape index: {}]   ;;  %s5113_s2 = inlined_call_operand.hbm [shape: bf16[32,32], index: 2, kind: input, shape index: {}]   ;;  %s5114_s3 = inlined_call_operand.vmem [shape: f32[1,32], index: 3, kind: input, shape index: {}]   ;;  %s5115_s4 = inlined_call_operand.vmem [shape: bf16[48,64], index: 4, kind: input, shape index: {}]   ;;  %s5116_s5 = inlined_call_operand.vmem [shape: f32[1,64], index: 5, kind: input, shape index: {}]   ;;  %s5117_s6 = inlined_call_operand.hbm [shape: bf16[32,32], index: 6, kind: input, shape index: {}]   ;;  %s5118_s7 = inlined_call_operand.vmem [shape: f32[1,32], index: 7, kind: input, shape index: {}]   ;;  %s5119_s8 = inlined_call_operand.hbm [shape: bf16[32,64], index: 8, kind: input, shape index: {}]   ;;  %s5120_s9 = inlined_call_operand.vmem [shape: f32[1,64], index: 9, kind: input, shape index: {}]   ;;  %s5121_s10 = inlined_call_operand.vmem [shape: bf16[64,32], index: 10, kind: input, shape index: {}]   ;;  %s5122_s11 = inlined_call_operand.vmem [shape: f32[1,32], index: 11, kind: input, shape index: {}]   ;;  %s5123_s12 = inlined_call_operand.vmem [shape: f32[1,32], index: 12, kind: input, shape index: {}]   ;;  %s5124_s13 = inlined_call_operand.vmem [shape: f32[1,32], index: 13, kind: input, shape index: {}]   ;;  %s5125_s14 = inlined_call_operand.hbm [shape: f32[2,8,32], index: 14, kind: output, shape index: {}]  }
   0x1   :  { %5138 = sst [smem:[#allocation19_spill]] %s5113_s2 }
   0x2   :  { %5139 = sst [smem:[#allocation20_spill]] %s5120_s9 }
   0x3   :  { %5140 = sst [smem:[#allocation21_spill]] %s5121_s10 }
   0x4   :  { %5141 = sst [smem:[#allocation22_spill]] %s5122_s11 }
   0x5   :  { %5142 = sst [smem:[#allocation23_spill]] %s5125_s14 }
   0x6   :  { %19 = vsyncpa [#allocation4], 0 }
   0x7   :  { %20 = vsyncpa [#allocation7], 0 }
   0x8   :  { %21 = vsyncpa [#allocation10], 0 }
   0x9   :  { %22 = vsyncpa [#allocation5], 0  ;;  %s4384_s29 = smov 0   ;;  %s4386_s30 = smov 0  }
   0xa   :  { %s4388_s15 = smov 0  }
   0xb LB: > { %5143 = sst [smem:[#allocation16_spill]] %s4281_s30  ;;  %s4287_s16 = smov [#allocation6]   ;;  %s4285_s15 = sphi %s4388_s15, %s28_s15   ;;  %s4281_s30 = sphi %s4386_s30, %s5165_s30   ;;  %s4277_s29 = sphi %s4384_s29, %s5164_s29  }
   0xc   : > { %5144 = sst [smem:[#allocation17_spill]] %s4285_s15  ;;  %s405_s17 = sshll.u32 %s4287_s16, 4  ;;  %s4408_s17 = int_to_ptr.vmem [resolvable:$true] %s405_s17 }
   0xd   : > { %s5126_s18 = sadd.s32 4294967295, %s4285_s15   ;;  %p3682_p0 = scmp.ge.s32.totalorder %s4285_s15, 1 }
   0xe   : > { %p377_p1 = scmp.lt.s32.totalorder %s4285_s15, 3  ;;  %p4404_p2 = scmp.eq.s32.totalorder %s5126_s18, 0 }
   0xf   : > { %s37_s22 = sadd.s32 1, %s4281_s30  ;;  %s4288_s24 = smov [#allocation3]  }
  0x10   : > { %s5145_s19 = scalar_select %p4404_p2, 1, 0 }
  0x11   : > { %p4410_p3 = pnand %p3682_p0, %p377_p1  ;;  %p4423_p6 = scmp.ge.s32.totalorder %s37_s22, 2 }
  0x12   : > { %s392_s25 = sshll.u32 %s4288_s24, 4  ;;  %s5149_s2 = sld [smem:[#allocation19_spill]]  ;;  %s393_s25 = int_to_ptr.vmem [resolvable:$true] %s392_s25 }
  0x13   : > { %s5146_s20 = scalar_select %p4410_p3, 1, 0 }
  0x14   : > { %p3979_p4 = pneg %p4410_p3 }
  0x16   : > { %p4418_p5 = pnand %p4404_p2, %p3979_p4 }
  0x18   : > { %s4109_s28 = scalar_lea.hbm %s5149_s2, 256  ;;  %p4435_p8 = pneg %p4418_p5 }
  0x19   : > { %p4110_p7 = scmp.ne.s32.totalorder %s5149_s2, %s4109_s28  ;;  %p4116_p11 = scmp.lt.u32.totalorder %s4109_s28, %s5149_s2 }
  0x1b   : > { %p4112_p9 = pnand %p4435_p8, %p4110_p7 }
  0x1d   : > { %p4113_p10 = pneg %p4112_p9 }
  0x1f   : > { %p4118_p12 = pnand %p4116_p11, %p4113_p10 }
  0x21   : > { %4121 = shalt.err (!%p4118_p12)
}
  0x22   : > { %s4122_s18 = scalar_lea.vmem %s4408_s17, 256  ;;  %p4130_p4 = scmp.lt.s32.totalorder %s4408_s17, %s4408_s17 }
  0x23   : > { %p4123_p13 = scmp.ne.s32.totalorder %s4408_s17, %s4122_s18  ;;  %p4131_p2 = scmp.lt.s32.totalorder %s4122_s18, %s4122_s18 }
  0x25   : > { %p4125_p0 = pnand %p4123_p13, %p4435_p8  ;;  %p4132_p7 = por %p4131_p2, %p4130_p4 }
  0x27   : > { %p4126_p1 = pneg %p4125_p0 }
  0x29   : > { %p4133_p9 = pnand %p4132_p7, %p4126_p1 }
  0x2b   : > { %4136 = shalt.err (!%p4133_p9)
}
  0x2c   : > { %s5134_s24 = smov 64   ;;  %s5136_s30 = smov 4  }
  0x2d   : > { %3985 = dma.hbm_to_vmem [thread:$0]  (!%p4418_p5), %s5149_s2, 256, %s4408_s17, [#allocation7], %s5134_s24, %s5134_s24, %s5136_s30  }
  0x2e   : > { %s5167_s22 = smov (%p4423_p6, %s37_s22), 0  ;;  %s4137_s16 = scalar_lea.hbm %s5111_s0, 256 }
  0x2f   : > { %5151 = sst [smem:[#allocation18_spill]] %s5167_s22  ;;  %p4138_p2 = scmp.ne.s32.totalorder %s5111_s0, %s4137_s16 }
  0x30   : > { %p4144_p12 = scmp.lt.u32.totalorder %s4137_s16, %s5111_s0 }
  0x31   : > { %p4140_p10 = pnand %p4138_p2, %p4435_p8 }
  0x33   : > { %p4141_p11 = pneg %p4140_p10 }
  0x35   : > { %p4146_p13 = pnand %p4144_p12, %p4141_p11 }
  0x37   : > { %4149 = shalt.err (!%p4146_p13)
}
  0x38   : > { %s4150_s17 = scalar_lea.vmem %s393_s25, 256  ;;  %p4158_p4 = scmp.lt.s32.totalorder %s393_s25, %s393_s25 }
  0x39   : > { %p4151_p6 = scmp.ne.s32.totalorder %s393_s25, %s4150_s17  ;;  %p4159_p7 = scmp.lt.s32.totalorder %s4150_s17, %s4150_s17 }
  0x3b   : > { %p4153_p0 = pnand %p4151_p6, %p4435_p8  ;;  %p4160_p9 = por %p4159_p7, %p4158_p4 }
  0x3d   : > { %p4154_p1 = pneg %p4153_p0 }
  0x3f   : > { %p4161_p3 = pnand %p4160_p9, %p4154_p1 }
  0x41   : > { %4164 = shalt.err (!%p4161_p3)
}
  0x42   : > { %s4291_s11 = smov 128   ;;  %s4292_s23 = smov 8  }
  0x43   : > { %3982 = dma.hbm_to_vmem [thread:$0]  (!%p4418_p5), %s5111_s0, 256, %s393_s25, [#allocation4], %s4291_s11, %s4291_s11, %s4292_s23  }
  0x44   : > { %s4293_s15 = smov [#allocation8]   ;;  %s4294_s27 = smov [#allocation9]  }
  0x45   : > { %s427_s26 = sshll.u32 %s4293_s15, 4  ;;  %s443_s28 = sshll.u32 %s4294_s27, 4  ;;  %s428_s26 = int_to_ptr.vmem [resolvable:$true] %s427_s26  ;;  %s444_s28 = int_to_ptr.vmem [resolvable:$true] %s443_s28 }
  0x46   : > { %s4165_s17 = scalar_lea.hbm %s5117_s6, 256 }
  0x47   : > { %p4166_p3 = scmp.ne.s32.totalorder %s5117_s6, %s4165_s17  ;;  %p4172_p11 = scmp.lt.u32.totalorder %s4165_s17, %s5117_s6 }
  0x49   : > { %p4168_p2 = pnand %p4166_p3, %p4435_p8 }
  0x4b   : > { %p4169_p10 = pneg %p4168_p2 }
  0x4d   : > { %p4174_p12 = pnand %p4172_p11, %p4169_p10 }
  0x4f   : > { %4177 = shalt.err (!%p4174_p12)
}
  0x50   : > { %s4178_s25 = scalar_lea.vmem %s428_s26, 256  ;;  %p4186_p1 = scmp.lt.s32.totalorder %s428_s26, %s428_s26 }
  0x51   : > { %p4179_p13 = scmp.ne.s32.totalorder %s428_s26, %s4178_s25  ;;  %p4187_p4 = scmp.lt.s32.totalorder %s4178_s25, %s4178_s25 }
  0x53   : > { %p4181_p6 = pnand %p4179_p13, %p4435_p8  ;;  %p4188_p7 = por %p4187_p4, %p4186_p1 }
  0x55   : > { %p4182_p0 = pneg %p4181_p6 }
  0x57   : > { %p4189_p9 = pnand %p4188_p7, %p4182_p0 }
  0x59   : > { %4192 = shalt.err (!%p4189_p9)
}
  0x5a   : > { %s5152_s24 = smov 4   ;;  %s5153_s30 = smov 64  }
  0x5b   : > { %3988 = dma.hbm_to_vmem [thread:$0]  (!%p4418_p5), %s5117_s6, 256, %s428_s26, [#allocation7], %s5153_s30, %s5153_s30, %s5152_s24  }
  0x5c   : > { %s4193_s9 = scalar_lea.hbm %s5119_s8, 256 }
  0x5d   : > { %p4194_p3 = scmp.ne.s32.totalorder %s5119_s8, %s4193_s9  ;;  %p4200_p11 = scmp.lt.u32.totalorder %s4193_s9, %s5119_s8 }
  0x5f   : > { %p4196_p2 = pnand %p4194_p3, %p4435_p8 }
  0x61   : > { %p4197_p10 = pneg %p4196_p2 }
  0x63   : > { %p4202_p12 = pnand %p4200_p11, %p4197_p10 }
  0x65   : > { %4205 = shalt.err (!%p4202_p12)
}
  0x66   : > { %s4206_s18 = scalar_lea.vmem %s444_s28, 256  ;;  %p4214_p1 = scmp.lt.s32.totalorder %s444_s28, %s444_s28 }
  0x67   : > { %p4207_p13 = scmp.ne.s32.totalorder %s444_s28, %s4206_s18  ;;  %p4215_p4 = scmp.lt.s32.totalorder %s4206_s18, %s4206_s18 }
  0x69   : > { %p4209_p6 = pnand %p4207_p13, %p4435_p8  ;;  %p4216_p7 = por %p4215_p4, %p4214_p1 }
  0x6b   : > { %p4210_p0 = pneg %p4209_p6 }
  0x6d   : > { %p4217_p9 = pnand %p4216_p7, %p4210_p0 }
  0x6f   : > { %4220 = shalt.err (!%p4217_p9)
}
  0x70   : > { %3991 = dma.hbm_to_vmem [thread:$0]  (!%p4418_p5), %s5119_s8, 256, %s444_s28, [#allocation10], %s5153_s30, %s5153_s30, %s5152_s24  }
  0x71   : > { %p5154_p3 = scmp.ne.s32.totalorder %s5146_s20, 0 }
  0x72   : > { %p5155_p8 = scmp.ne.s32.totalorder (!%p5154_p3), %s5145_s19, 0 }
  0x73   : > { %488 = sbr.rel (%p5154_p3) target bundleno = 2850 (0xb22), region = 76 }
  0x7a   : > { %4260 = dma.done.wait (%p5155_p8), [#allocation4], 256  }
  0x7b   : > { %4262 = vsyncadd (%p5155_p8), [#allocation4], 4294967040 }
  0x7c   : > { %4264 = dma.done.wait (%p5155_p8), [#allocation7], 512  }
  0x7d   : > { %4266 = vsyncadd (%p5155_p8), [#allocation7], 4294966784 }
  0x7e   : > { %4268 = dma.done.wait (%p5155_p8), [#allocation10], 256  }
  0x7f   : > { %4270 = vsyncadd (%p5155_p8), [#allocation10], 4294967040  ;;  %p548_p5 = scmp.lt.s32.totalorder %s4277_s29, 1  ;;  %p3695_p2 = scmp.ne.s32.totalorder %s4277_s29, 0 }
  0x80   : > { %v564_v0 = vld [vmem:[#allocation3] sm:$0xff] (!%p3695_p2)  ;;  %vm566_vm0 = vcmask (!%p3695_p2), 261120   ;;  %v565_v1 = vld [vmem:[#allocation3 + $0x8] sm:$0xff] (!%p3695_p2) }
  0x81   : > { %s549_s14 = scalar_select %p548_p5, %s4277_s29, 1 }
  0x82   : > { %563 = sbr.rel (%p3695_p2) target bundleno = 137 (0x89), region = 96  ;;  %567 = vst.msk [vmem:[#allocation2] sm:$0xff] (!%p3695_p2), %vm566_vm0, %v564_v0  ;;  %568 = vst.msk [vmem:[#allocation2 + $0x8] sm:$0xff] (!%p3695_p2), %vm566_vm0, %v565_v1 }
  0x83   : > { %s3765_s20 = sshll.u32 %s549_s14, 4 }
  0x84   : > { %s4542_s25 = scalar_lea.vmem %s5112_s1, %s3765_s20 }
  0x89 PF: > { %v4048_v2 = vld [vmem:[#allocation6] sm:$0xff]   ;;  %v4295_v3 = vmov 0.0   ;;  %v4049_v4 = vld [vmem:[#allocation6 + $0x8] sm:$0xff]   ;;  %vm4296_vm1 = vmmov 0   ;;  %vm601_vm2 = vcmask 261120   ;;  %vm687_vm3 = vcmask 392192  }
  0x8a   : > { %3817 = vmatprep.subr.bf16.mxu1 %v4295_v3  ;;  %3835 = vmatprep.subr.bf16.mxu0 %v4295_v3  ;;  %v569_v5 = vld [vmem:[#allocation2] sm:$0xff]  ;;  %v570_v6 = vld [vmem:[#allocation2 + $0x8] sm:$0xff]  ;;  %v4052_v11 = vld [vmem:[%s5115_s4 + $0x10] sm:$0xff]   ;;  %s4297_s27 = smov 104   ;;  %s4298_s16 = smov 120   ;;  %v777_v36 = vlaneseq  ;;  %v4303_v49 = vmov 0  }
  0x8b   : > { %3818 = vmatpush3.bf16.msra.mxu1 %v4048_v2  ;;  %3821 = vmatprep.mubr.msk.bf16.mxu1 %vm4296_vm1, %v4295_v3  ;;  %v4050_v7 = vld [vmem:[%s5115_s4] sm:$0xff]   ;;  %v571_v8 = vpack.c.bf16 %v570_v6, %v569_v5  ;;  %v4051_v10 = vld [vmem:[%s5115_s4 + $0x8] sm:$0xff]   ;;  %s4299_s18 = smov 112   ;;  %s4300_s26 = smov 96   ;;  %v4301_v34 = vmov 1983009808   ;;  %v4589_v50 = vpack.i.b16 %v4303_v49, %v4303_v49 }
  0x8c   : > { %3819 = vmatprep.subr.bf16.mxu1 %v4295_v3  ;;  %3837 = vmatprep.mubr.msk.bf16.mxu0 %vm4296_vm1, %v4295_v3  ;;  %v4053_v9 = vld [vmem:[%s4542_s25] sm:$0xff]   ;;  %v4054_v12 = vld [vmem:[%s4542_s25 + $0x8] sm:$0xff]   ;;  %v775_v35 = vunpack.c.l.s4 %v4301_v34  ;;  %v778_v40 = vshrl.u32 %v777_v36, 7  ;;  %v4302_v44 = vmov 1934713408   ;;  %vm2109_vm4 = vcmask 64512  }
  0x8d   : > { %v3696_v13 = vld [vmem:[%s5114_s3] ss:$0 sm:$0xff]  ;;  %v806_v45 = vunpack.c.l.s4 %v4302_v44  ;;  %vm2478_vm5 = vcmask 130048   ;;  %s4304_s17 = smov 16   ;;  %s4305_s14 = smov 8   ;;  %vm3242_vm6 = vcmask 195584  }
  0x8e   : > { %v3700_v22 = vld [vmem:[%s5116_s5] ss:$0 sm:$0xff]  ;;  %v776_v39 = vunpack.c.0.s8 %v775_v35  ;;  %s4306_s20 = smov 24   ;;  %s5156_s11 = sld [smem:[#allocation21_spill]]  ;;  %vm3482_vm7 = vcmask 523264  }
  0x8f   : > { %3820 = vmatpush3.bf16.msra.mxu1 %v4049_v4  ;;  %v807_v60 = vunpack.c.0.s8 %v806_v45  ;;  %s5158_s28 = sld [smem:[#allocation22_spill]]  ;;  %p3760_p10 = scmp.ne.s32.totalorder %s4277_s29, 1 }
  0x90   : > { %3825 = vmatprep.subr.bf16.mxu1 %v4050_v7  ;;  %v4591_v53 = vsub.s32 %v776_v39, %v778_v40 }
  0x92   : > { %3822 = vmatmul.mubr.msk.bf16.vlgmr.msra.gmra.mrb[0].mxu1 %vm601_vm2, %v571_v8 }
  0x93   : > { %3826 = vmatpush3.bf16.msra.mxu1 %v4050_v7  ;;  %3831 = vmatprep.mubr.msk.bf16.mxu1 %vm687_vm3, %v4053_v9  ;;  %v4602_v9 = vsub.s32 %v807_v60, %v778_v40 }
  0x94   : > { %3827 = vmatprep.subr.bf16.mxu1 %v4051_v10 }
  0x97   : > { %3828 = vmatpush3.bf16.msra.mxu1 %v4051_v10 }
  0x98   : > { %3829 = vmatprep.subr.bf16.mxu1 %v4052_v11 }
  0x9b   : > { %3830 = vmatpush3.bf16.msra.mxu1 %v4052_v11 }
  0x9c   : > { %3841 = vmatprep.subr.bf16.mxu1 %v4295_v3 }
  0x9e   : > { %3832 = vmatmul.mubr.msk.bf16.vlgmr.msra.gmra.mrb[4].mxu1 %vm687_vm3, %v4054_v12 }
  0x9f   : > { %3843 = vmatprep.mubr.msk.bf16.mxu1 %vm4296_vm1, %v4295_v3 }
 0x165   : > { %v639_v14 = vpop.f32.mrb[0].mxu1 }
 0x166   : > { %v640_v15 = vadd.f32 %v3696_v13, %v639_v14  ;;  %v3823_v16 = vpop.f32.mrb[1].mxu1 }
 0x167   : > { %v642_v17 = vpop.f32.mrb[2].mxu1 }
 0x168   : > { %v643_v18 = vadd.f32 %v3696_v13, %v642_v17  ;;  %v3824_v19 = vpop.f32.mrb[3].mxu1 }
 0x16a   : > { %v4570_v20 = vpack.c.bf16 %v643_v18, %v640_v15 }
 0x16c   : > { %v755_v63 = vshrl.u32 %v4570_v20, 16 }
 0x171   : > { %v3833_v21 = vpop.f32.mrb[4].mxu1 }
 0x172   : > { %v728_v23 = vpop.f32.mrb[5].mxu1  ;;  %v737_v25 = vadd.f32 %v3833_v21, %v3700_v22 }
 0x173   : > { %v3834_v24 = vpop.f32.mrb[6].mxu1  ;;  %v729_v28 = vadd.f32 %v3700_v22, %v728_v23 }
 0x174   : > { %v740_v26 = vadd.f32 %v3834_v24, %v3700_v22  ;;  %v731_v27 = vpop.f32.mrb[7].mxu1 }
 0x175   : > { %v732_v29 = vadd.f32 %v3700_v22, %v731_v27 }
 0x176   : > { %v4575_v30 = vpack.c.bf16 %v740_v26, %v737_v25 }
 0x177   : > { %v1029_v31 = vpack.c.bf16 %v732_v29, %v729_v28 }
 0x178   : > { %v1065_v14 = vshrl.u32 %v4575_v30, 16 }
 0x179   : > { %1041 = vrot.lane.b32.xlu1 %v1029_v31, %s4297_s27  ;;  %1033 = vrot.lane.b32.xlu0 %v1029_v31, %s4298_s16  ;;  %v1049_v43 = vshrl.u32 %v1029_v31, 16 }
 0x17d   : > { %745 = vrot.lane.b32.xlu1 %v4570_v20, %s4298_s16  ;;  %1037 = vrot.lane.b32.xlu0 %v1029_v31, %s4299_s18 }
 0x181   : > { %749 = vrot.lane.b32.xlu1 %v4570_v20, %s4297_s27  ;;  %747 = vrot.lane.b32.xlu0 %v4570_v20, %s4299_s18 }
 0x185   : > { %1039 = vrot.lane.b32.xlu1 %v4575_v30, %s4299_s18  ;;  %1035 = vrot.lane.b32.xlu0 %v4575_v30, %s4298_s16 }
 0x189   : > { %1043 = vrot.lane.b32.xlu0 %v4575_v30, %s4297_s27 }
 0x18d   : > { %1565 = vrot.lane.b32.xlu0 %v1029_v31, %s4300_s26 }
 0x1eb   : > { %v1042_v32 = vpop.permute.xlu1 %1041  ;;  %v1034_v33 = vpop.permute.xlu0 %1033 }
 0x1ec   : > { %1577 = vrot.lane.b32.xlu0 %v1042_v32, %s4300_s26  ;;  %1569 = vrot.lane.b32.xlu1 %v1034_v33, %s4300_s26  ;;  %v1050_v41 = vshrl.u32 %v1034_v33, 16  ;;  %v1047_v51 = vpack.i.b16 %v1034_v33, %v1029_v31  ;;  %v1058_v52 = vshrl.u32 %v1042_v32, 16 }
 0x1ee   : > { %v1051_v54 = vpack.i.b16 %v1050_v41, %v1049_v43  ;;  %v1077_v62 = vcombine.high %v1047_v51, %v4589_v50  ;;  %v1084_v4 = vrot.slane %v1047_v51, %v4591_v53 }
 0x1ef   : > { %v746_v37 = vpop.permute.xlu1 %745  ;;  %v1038_v38 = vpop.permute.xlu0 %1037 }
 0x1f0   : > { %1573 = vrot.lane.b32.xlu1 %v1038_v38, %s4300_s26  ;;  %v1055_v42 = vpack.i.b16 %v1042_v32, %v1038_v38  ;;  %v1057_v46 = vshrl.u32 %v1038_v38, 16  ;;  %v756_v55 = vshrl.u32 %v746_v37, 16  ;;  %v753_v59 = vpack.i.b16 %v746_v37, %v4570_v20 }
 0x1f1   : > { %v1143_v1 = vcombine.high %v1051_v54, %v4589_v50  ;;  %v1091_v11 = vrot.slane %v1077_v62, %v4591_v53  ;;  %v1150_v15 = vrot.slane %v1051_v54, %v4591_v53 }
 0x1f2   : > { %v1092_v56 = vcombine.high %v1055_v42, %v4589_v50  ;;  %v1059_v61 = vpack.i.b16 %v1058_v52, %v1057_v46  ;;  %v1099_v0 = vrot.slane %v1055_v42, %v4591_v53  ;;  %v757_v5 = vpack.i.b16 %v756_v55, %v755_v63 }
 0x1f3   : > { %v750_v47 = vpop.permute.xlu1 %749  ;;  %v748_v48 = vpop.permute.xlu0 %747  ;;  %v773_v8 = vcombine.high %v753_v59, %v4589_v50  ;;  %v1157_v16 = vrot.slane %v1143_v1, %v4591_v53  ;;  %v780_v19 = vrot.slane %v753_v59, %v4591_v53 }
 0x1f4   : > { %v764_v57 = vshrl.u32 %v750_v47, 16  ;;  %v763_v58 = vshrl.u32 %v748_v48, 16  ;;  %v761_v2 = vpack.i.b16 %v750_v47, %v748_v48  ;;  %v1106_v6 = vrot.slane %v1092_v56, %v4591_v53 }
 0x1f5   : > { %v1165_v10 = vrot.slane %v1059_v61, %v4591_v53  ;;  %v1107_v12 = vcombine.low %v1084_v4, %v1099_v0  ;;  %v1158_v13 = vcombine.high %v1059_v61, %v4589_v50  ;;  %v1108_v17 = vcombine.high %v1084_v4, %v1099_v0 }
 0x1f6   : > { %v765_v7 = vpack.i.b16 %v764_v57, %v763_v58  ;;  %v795_v18 = vrot.slane %v761_v2, %v4591_v53  ;;  %v839_v20 = vcombine.high %v757_v5, %v4589_v50  ;;  %v1123_v21 = vcombine.low %v1091_v11, %v1106_v6 }
 0x1f7   : > { %v4614_v23 = vpop.permute.xlu0 %1035  ;;  %v4617_v24 = vrot.slane %v773_v8, %v4591_v53  ;;  %v1124_v25 = vcombine.high %v1091_v11, %v1106_v6  ;;  %v1173_v26 = vcombine.low %v1150_v15, %v1165_v10  ;;  %v1174_v27 = vcombine.high %v1150_v15, %v1165_v10  ;;  %v4636_v44 = vpop.permute.xlu1 %1039 }
 0x1f8   : > { %v861_v22 = vrot.slane %v765_v7, %v4591_v53  ;;  %v846_v28 = vrot.slane %v757_v5, %v4591_v53  ;;  %v1115_v29 = vrot.slane %v1107_v12, %v4602_v9  ;;  %v1172_v31 = vrot.slane %v1158_v13, %v4591_v53 }
 0x1f9   : > { %v788_v32 = vcombine.high %v761_v2, %v4589_v50  ;;  %v1122_v33 = vrot.slane %v1108_v17, %v4602_v9  ;;  %v803_v34 = vcombine.low %v780_v19, %v795_v18  ;;  %v804_v35 = vcombine.high %v780_v19, %v795_v18 }
 0x1fa   : > { %v854_v36 = vcombine.high %v765_v7, %v4589_v50  ;;  %v4626_v37 = vrot.slane %v839_v20, %v4591_v53  ;;  %v1131_v38 = vrot.slane %v1123_v21, %v4602_v9  ;;  %v869_v39 = vcombine.low %v846_v28, %v861_v22 }
 0x1fb   : > { %v870_v40 = vcombine.high %v846_v28, %v861_v22  ;;  %v1138_v41 = vrot.slane %v1124_v25, %v4602_v9  ;;  %v4631_v42 = vrot.slane %v1173_v26, %v4602_v9  ;;  %v4634_v43 = vrot.slane %v1174_v27, %v4602_v9  ;;  %v4644_v52 = vpop.permute.xlu0 %1043 }
 0x1fc   : > { %v1063_v45 = vpack.i.b16 %v4614_v23, %v4575_v30  ;;  %v1189_v46 = vcombine.low %v1157_v16, %v1172_v31  ;;  %v1190_v47 = vcombine.high %v1157_v16, %v1172_v31  ;;  %v4641_v48 = vrot.slane %v788_v32, %v4591_v53 }
 0x1fd   : > { %v1066_v51 = vshrl.u32 %v4614_v23, 16  ;;  %v1341_v54 = vcombine.low %v1115_v29, %v1122_v33  ;;  %v811_v55 = vrot.slane %v803_v34, %v4602_v9  ;;  %v818_v56 = vrot.slane %v804_v35, %v4602_v9 }
 0x1fe   : > { %v4649_v57 = vrot.slane %v854_v36, %v4591_v53  ;;  %v3712_v58 = vcombine.high %v1115_v29, %v1122_v33  ;;  %v4652_v59 = vrot.slane %v869_v39, %v4602_v9  ;;  %v4655_v60 = vrot.slane %v870_v40, %v4602_v9 }
 0x1ff   : > { %v1073_v61 = vshrl.u32 %v4636_v44, 16  ;;  %v1067_v62 = vpack.i.b16 %v1066_v51, %v1065_v14  ;;  %v1209_v63 = vcombine.high %v1063_v45, %v4589_v50  ;;  %v1071_v0 = vpack.i.b16 %v4644_v52, %v4636_v44 }
 0x200   : > { %v1074_v1 = vshrl.u32 %v4644_v52, 16  ;;  %v1197_v2 = vrot.slane %v1189_v46, %v4602_v9  ;;  %v1204_v4 = vrot.slane %v1190_v47, %v4602_v9  ;;  %v819_v5 = vcombine.low %v4617_v24, %v4641_v48 }
 0x201   : > { %v820_v6 = vcombine.high %v4617_v24, %v4641_v48  ;;  %v885_v7 = vcombine.low %v4626_v37, %v4649_v57  ;;  %v905_v8 = vcombine.low %v811_v55, %v818_v56  ;;  %v1224_v11 = vcombine.high %v1071_v0, %v4589_v50 }
 0x202   : > { %v1075_v10 = vpack.i.b16 %v1074_v1, %v1073_v61  ;;  %v3708_v12 = vcombine.high %v811_v55, %v818_v56  ;;  %v930_v13 = vcombine.low %v4652_v59, %v4655_v60  ;;  %v1357_v14 = vcombine.low %v1131_v38, %v1138_v41 }
 0x203   : > { %v3713_v15 = vcombine.high %v1131_v38, %v1138_v41  ;;  %v1216_v16 = vrot.slane %v1063_v45, %v4591_v53  ;;  %v1223_v17 = vrot.slane %v1209_v63, %v4591_v53  ;;  %v1275_v18 = vcombine.high %v1067_v62, %v4589_v50 }
 0x204   : > { %v1238_v19 = vrot.slane %v1224_v11, %v4591_v53  ;;  %v1282_v20 = vrot.slane %v1067_v62, %v4591_v53  ;;  %v1231_v21 = vrot.slane %v1071_v0, %v4591_v53  ;;  %v1290_v22 = vcombine.high %v1075_v10, %v4589_v50 }
 0x205   : > { %v1297_v25 = vrot.slane %v1075_v10, %v4591_v53  ;;  %v1348_v26 = vrot.slane %v1341_v54, %v4591_v53  ;;  %v1356_v27 = vrot.slane %v3712_v58, %v4591_v53  ;;  %v1364_v28 = vrot.slane %v1357_v14, %v4591_v53 }
 0x206   : > { %v1372_v29 = vrot.slane %v3713_v15, %v4591_v53  ;;  %v1255_v31 = vcombine.low %v1223_v17, %v1238_v19  ;;  %v1256_v32 = vcombine.high %v1223_v17, %v1238_v19  ;;  %v886_v35 = vcombine.high %v4626_v37, %v4649_v57 }
 0x207   : > { %v1305_v33 = vcombine.low %v1282_v20, %v1297_v25  ;;  %v1306_v34 = vcombine.high %v1282_v20, %v1297_v25  ;;  %v4688_v36 = vrot.slane %v905_v8, %v4591_v53  ;;  %v4691_v38 = vrot.slane %v3708_v12, %v4591_v53 }
 0x208   : > { %v1391_v39 = vcombine.low %v4631_v42, %v4634_v43  ;;  %v3709_v40 = vcombine.high %v4652_v59, %v4655_v60  ;;  %v1239_v41 = vcombine.low %v1216_v16, %v1231_v21  ;;  %v1240_v45 = vcombine.high %v1216_v16, %v1231_v21 }
 0x209   : > { %v1304_v46 = vrot.slane %v1290_v22, %v4591_v53  ;;  %v937_v47 = vrot.slane %v930_v13, %v4591_v53  ;;  %v1289_v51 = vrot.slane %v1275_v18, %v4591_v53  ;;  %v1373_v54 = vcombine.low %v1348_v26, %v1356_v27 }
 0x20a   : > { %v1381_v55 = vcombine.low %v1364_v28, %v1372_v29  ;;  %v1263_v56 = vrot.slane %v1255_v31, %v4602_v9  ;;  %v1270_v58 = vrot.slane %v1256_v32, %v4602_v9  ;;  %v1313_v61 = vrot.slane %v1305_v33, %v4602_v9 }
 0x20b   : > { %v1320_v62 = vrot.slane %v1306_v34, %v4602_v9  ;;  %v1398_v59 = vrot.slane %v1391_v39, %v4591_v53  ;;  %v3714_v60 = vcombine.high %v4631_v42, %v4634_v43  ;;  %v1407_v63 = vcombine.low %v1197_v2, %v1204_v4 }
 0x20c   : > { %v3715_v0 = vcombine.high %v1197_v2, %v1204_v4  ;;  %v1247_v1 = vrot.slane %v1239_v41, %v4602_v9  ;;  %v1254_v8 = vrot.slane %v1240_v45, %v4602_v9  ;;  %v1321_v10 = vcombine.low %v1289_v51, %v1304_v46 }
 0x20d   : > { %v1322_v11 = vcombine.high %v1289_v51, %v1304_v46  ;;  %v1388_v12 = vrot.slane %v1381_v55, %v4602_v9  ;;  %v1406_v13 = vrot.slane %v3714_v60, %v4591_v53  ;;  %v1414_v14 = vrot.slane %v1407_v63, %v4591_v53 }
 0x20e   : > { %v1422_v15 = vrot.slane %v3715_v0, %v4591_v53  ;;  %v945_v16 = vrot.slane %v3709_v40, %v4591_v53  ;;  %v1457_v42 = vcombine.low %v1263_v56, %v1270_v58  ;;  %v3717_v43 = vcombine.high %v1263_v56, %v1270_v58 }
 0x20f   : > { %v1380_v2 = vrot.slane %v1373_v54, %v4602_v9  ;;  %v1491_v4 = vcombine.low %v1313_v61, %v1320_v62  ;;  %v3718_v17 = vcombine.high %v1313_v61, %v1320_v62  ;;  %v1423_v18 = vcombine.low %v1398_v59, %v1406_v13 }
 0x210   : > { %v1431_v19 = vcombine.low %v1414_v14, %v1422_v15  ;;  %v1329_v20 = vrot.slane %v1321_v10, %v4602_v9  ;;  %v1336_v21 = vrot.slane %v1322_v11, %v4602_v9  ;;  %v1441_v22 = vcombine.low %v1247_v1, %v1254_v8 }
 0x211   : > { %v3716_v25 = vcombine.high %v1247_v1, %v1254_v8  ;;  %v893_v26 = vrot.slane %v885_v7, %v4602_v9  ;;  %v1389_v27 = vcombine.low %v1380_v2, %v1388_v12  ;;  %v1430_v28 = vrot.slane %v1423_v18, %v4602_v9 }
 0x212   : > { %v1438_v29 = vrot.slane %v1431_v19, %v4602_v9  ;;  %v900_v31 = vrot.slane %v886_v35, %v4602_v9  ;;  %v921_v32 = vcombine.low %v4688_v36, %v4691_v38  ;;  %v946_v33 = vcombine.low %v937_v47, %v945_v16 }
 0x213   : > { %v1464_v34 = vrot.slane %v1457_v42, %v4591_v53  ;;  %v1472_v40 = vrot.slane %v3717_v43, %v4591_v53  ;;  %v1498_v41 = vrot.slane %v1491_v4, %v4591_v53  ;;  %v1506_v37 = vrot.slane %v3718_v17, %v4591_v53 }
 0x214   : > { %v1439_v39 = vcombine.low %v1430_v28, %v1438_v29  ;;  %v1448_v57 = vrot.slane %v1441_v22, %v4591_v53  ;;  %v1456_v7 = vrot.slane %v3716_v25, %v4591_v53  ;;  %v1507_v45 = vcombine.low %v1329_v20, %v1336_v21 }
 0x215   : > { %v3719_v46 = vcombine.high %v1329_v20, %v1336_v21  ;;  %v1544_v51 = vshrl.u32 %v1389_v27, 16  ;;  %v1440_v36 = vcombine.high %v1430_v28, %v1438_v29  ;;  %v953_v38 = vrot.slane %v946_v33, %v4602_v9 }
 0x216   : > { %v1543_v35 = vpack.i.b16 %v1439_v39, %v1389_v27  ;;  %v1545_v54 = vshrl.u32 %v1439_v39, 16  ;;  %v1390_v47 = vcombine.high %v1380_v2, %v1388_v12  ;;  %v1514_v55 = vrot.slane %v1507_v45, %v4591_v53 }
 0x217   : > { %v1522_v56 = vrot.slane %v3719_v46, %v4591_v53  ;;  %v1481_v62 = vcombine.low %v1464_v34, %v1472_v40  ;;  %v1523_v59 = vcombine.low %v1498_v41, %v1506_v37  ;;  %v827_v60 = vrot.slane %v819_v5, %v4602_v9 }
 0x218   : > { %v2114_v58 = vsel %vm2109_vm4, %v1543_v35, 0  ;;  %v1546_v61 = vpack.i.b16 %v1545_v54, %v1544_v51  ;;  %v834_v63 = vrot.slane %v820_v6, %v4602_v9  ;;  %v928_v0 = vrot.slane %v921_v32, %v4602_v9 }
 0x219   : > { %3836 = vmatpush3.bf16.xpose.msra.mxu0 %v2114_v58  ;;  %v1531_v1 = vcombine.low %v1514_v55, %v1522_v56  ;;  %v1551_v10 = vshrl.u32 %v1440_v36, 16  ;;  %v1473_v11 = vcombine.low %v1448_v57, %v1456_v7  ;;  %v980_v12 = vcombine.low %v893_v26, %v900_v31 }
 0x21a   : > { %v2160_v8 = vsel %vm2109_vm4, %v1546_v61, 0  ;;  %3847 = vmatprep.subr.bf16.mxu0 %v4295_v3  ;;  %v3711_v13 = vcombine.high %v893_v26, %v900_v31  ;;  %v1009_v14 = vshrl.u32 %v953_v38, 16  ;;  %v1549_v15 = vpack.i.b16 %v1440_v36, %v1390_v47 }
 0x21b   : > { %3842 = vmatpush3.bf16.xpose.msra.mxu1 %v2160_v8  ;;  %v1538_v5 = vrot.slane %v1531_v1, %v4602_v9  ;;  %v1550_v24 = vshrl.u32 %v1390_v47, 16  ;;  %v1488_v48 = vrot.slane %v1481_v62, %v4602_v9  ;;  %v1530_v6 = vrot.slane %v1523_v59, %v4602_v9 }
 0x21c   : > { %3853 = vmatprep.subr.bf16.mxu1 %v4295_v3  ;;  %v955_v16 = vcombine.low %v827_v60, %v834_v63  ;;  %v3710_v42 = vcombine.high %v827_v60, %v834_v63  ;;  %v1008_v43 = vshrl.u32 %v928_v0, 16  ;;  %v1007_v2 = vpack.i.b16 %v953_v38, %v928_v0 }
 0x21d   : > { %v1552_v4 = vpack.i.b16 %v1551_v10, %v1550_v24  ;;  %v1480_v17 = vrot.slane %v1473_v11, %v4602_v9  ;;  %v1539_v18 = vcombine.low %v1530_v6, %v1538_v5  ;;  %v987_v19 = vrot.slane %v980_v12, %v4591_v53 }
 0x21e   : > { %v995_v20 = vrot.slane %v3711_v13, %v4591_v53  ;;  %v2206_v21 = vsel %vm2109_vm4, %v1549_v15, 0  ;;  %v1010_v22 = vpack.i.b16 %v1009_v14, %v1008_v43  ;;  %v954_v25 = vcombine.high %v953_v38, %v4303_v49  ;;  %v1566_v14 = vpop.permute.xlu0 %1565 }
 0x21f   : > { %v1489_v26 = vcombine.low %v1480_v17, %v1488_v48  ;;  %v962_v27 = vrot.slane %v955_v16, %v4591_v53  ;;  %v970_v28 = vrot.slane %v3710_v42, %v4591_v53  ;;  %v2252_v29 = vsel %vm2109_vm4, %v1552_v4, 0 }
 0x220   : > { %3838 = vmatmul.mubr.msk.bf16.vlgmr.msra.gmra.mrb[0].mxu0 %vm2109_vm4, %v1007_v2  ;;  %v929_v31 = vcombine.high %v928_v0, %v4303_v49  ;;  %v1557_v32 = vshrl.u32 %v1539_v18, 16  ;;  %v996_v33 = vcombine.low %v987_v19, %v995_v20  ;;  %v1015_v39 = vshrl.u32 %v954_v25, 16 }
 0x221   : > { %3848 = vmatpush3.bf16.xpose.msra.mxu0 %v2206_v21  ;;  %3849 = vmatprep.mubr.msk.bf16.mxu0 %vm4296_vm1, %v4295_v3  ;;  %v1555_v34 = vpack.i.b16 %v1539_v18, %v1489_v26  ;;  %v1556_v40 = vshrl.u32 %v1489_v26, 16  ;;  %v971_v41 = vcombine.low %v962_v27, %v970_v28  ;;  %v1540_v45 = vcombine.high %v1530_v6, %v1538_v5 }
 0x222   : > { %3844 = vmatmul.mubr.msk.bf16.vlgmr.msra.gmra.mrb[8].mxu1 %vm2109_vm4, %v1010_v22  ;;  %3859 = vmatprep.subr.bf16.mxu0 %v4295_v3  ;;  %v1013_v37 = vpack.i.b16 %v954_v25, %v929_v31  ;;  %v1014_v57 = vshrl.u32 %v929_v31, 16  ;;  %v1003_v51 = vrot.slane %v996_v33, %v4602_v9  ;;  %v1490_v54 = vcombine.high %v1480_v17, %v1488_v48 }
 0x223   : > { %3854 = vmatpush3.bf16.xpose.msra.mxu1 %v2252_v29  ;;  %3855 = vmatprep.mubr.msk.bf16.mxu1 %vm4296_vm1, %v4295_v3  ;;  %v1558_v7 = vpack.i.b16 %v1557_v32, %v1556_v40  ;;  %v2298_v46 = vsel %vm2109_vm4, %v1555_v34, 0  ;;  %v978_v38 = vrot.slane %v971_v41, %v4602_v9  ;;  %v1563_v47 = vshrl.u32 %v1540_v45, 16 }
 0x224   : > { %3865 = vmatprep.subr.bf16.mxu1 %v4295_v3  ;;  %v1016_v35 = vpack.i.b16 %v1015_v39, %v1014_v57  ;;  %v1561_v55 = vpack.i.b16 %v1540_v45, %v1490_v54  ;;  %v1021_v56 = vshrl.u32 %v1003_v51, 16  ;;  %v1562_v58 = vshrl.u32 %v1490_v54, 16 }
 0x225   : > { %v2344_v36 = vsel %vm2109_vm4, %v1558_v7, 0  ;;  %v1019_v61 = vpack.i.b16 %v1003_v51, %v978_v38  ;;  %v1020_v62 = vshrl.u32 %v978_v38, 16  ;;  %v1004_v0 = vcombine.high %v1003_v51, %v4303_v49 }
 0x226   : > { %v1564_v59 = vpack.i.b16 %v1563_v47, %v1562_v58  ;;  %v2390_v60 = vsel %vm2109_vm4, %v1561_v55, 0  ;;  %v979_v8 = vcombine.high %v978_v38, %v4303_v49  ;;  %v1585_v48 = vshrl.u32 %v1566_v14, 16 }
 0x227   : > { %v1022_v63 = vpack.i.b16 %v1021_v56, %v1020_v62  ;;  %v1027_v10 = vshrl.u32 %v1004_v0, 16 }
 0x228   : > { %3850 = vmatmul.mubr.msk.bf16.vlgmr.msra.gmra.mrb[4].mxu0 %vm2109_vm4, %v1013_v37  ;;  %v2436_v1 = vsel %vm2109_vm4, %v1564_v59, 0  ;;  %v1025_v11 = vpack.i.b16 %v1004_v0, %v979_v8  ;;  %v1026_v12 = vshrl.u32 %v979_v8, 16 }
 0x229   : > { %3860 = vmatpush3.bf16.xpose.msra.mxu0 %v2298_v46  ;;  %3861 = vmatprep.mubr.msk.bf16.mxu0 %vm4296_vm1, %v4295_v3 }
 0x22a   : > { %3856 = vmatmul.mubr.msk.bf16.vlgmr.msra.gmra.mrb[12].mxu1 %vm2109_vm4, %v1016_v35  ;;  %3871 = vmatprep.subr.bf16.mxu0 %v4295_v3  ;;  %v1028_v13 = vpack.i.b16 %v1027_v10, %v1026_v12 }
 0x22b   : > { %3866 = vmatpush3.bf16.xpose.msra.mxu1 %v2344_v36  ;;  %3867 = vmatprep.mubr.msk.bf16.mxu1 %vm4296_vm1, %v4295_v3 }
 0x22c   : > { %3877 = vmatprep.subr.bf16.mxu1 %v4295_v3 }
 0x230   : > { %3862 = vmatmul.mubr.msk.bf16.vlgmr.msra.gmra.mrb[8].mxu0 %vm2109_vm4, %v1019_v61 }
 0x231   : > { %3872 = vmatpush3.bf16.xpose.msra.mxu0 %v2390_v60  ;;  %3873 = vmatprep.mubr.msk.bf16.mxu0 %vm4296_vm1, %v4295_v3 }
 0x232   : > { %3868 = vmatmul.mubr.msk.bf16.vlgmr.msra.gmra.mrb[16].mxu1 %vm2109_vm4, %v1022_v63  ;;  %3883 = vmatprep.subr.bf16.mxu0 %v4295_v3 }
 0x233   : > { %3878 = vmatpush3.bf16.xpose.msra.mxu1 %v2436_v1  ;;  %3879 = vmatprep.mubr.msk.bf16.mxu1 %vm4296_vm1, %v4295_v3 }
 0x234   : > { %3889 = vmatprep.subr.bf16.mxu1 %v4295_v3 }
 0x238   : > { %3874 = vmatmul.mubr.msk.bf16.vlgmr.msra.gmra.mrb[12].mxu0 %vm2109_vm4, %v1025_v11 }
 0x239   : > { %3885 = vmatprep.mubr.msk.bf16.mxu0 %vm4296_vm1, %v4295_v3 }
 0x23a   : > { %3880 = vmatmul.mubr.msk.bf16.vlgmr.msra.gmra.mrb[20].mxu1 %vm2109_vm4, %v1028_v13 }
 0x23b   : > { %3891 = vmatprep.mubr.msk.bf16.mxu1 %vm4296_vm1, %v4295_v3 }
 0x25e   : > { %v1570_v5 = vpop.permute.xlu1 %1569  ;;  %v1578_v6 = vpop.permute.xlu0 %1577 }
 0x25f   : > { %v1583_v15 = vpack.i.b16 %v1570_v5, %v1566_v14  ;;  %v1586_v24 = vshrl.u32 %v1570_v5, 16  ;;  %v1594_v4 = vshrl.u32 %v1578_v6, 16 }
 0x261   : > { %v1587_v16 = vpack.i.b16 %v1586_v24, %v1585_v48  ;;  %v1613_v43 = vcombine.high %v1583_v15, %v4589_v50  ;;  %v1620_v18 = vrot.slane %v1583_v15, %v4591_v53 }
 0x262   : > { %v1574_v42 = vpop.permute.xlu1 %1573 }
 0x263   : > { %v1591_v2 = vpack.i.b16 %v1578_v6, %v1574_v42  ;;  %v1593_v17 = vshrl.u32 %v1574_v42, 16  ;;  %v1679_v21 = vcombine.high %v1587_v16, %v4589_v50  ;;  %v1627_v25 = vrot.slane %v1613_v43, %v4591_v53 }
 0x264   : > { %v1686_v29 = vrot.slane %v1587_v16, %v4591_v53 }
 0x265   : > { %v1628_v19 = vcombine.high %v1591_v2, %v4589_v50  ;;  %v1635_v20 = vrot.slane %v1591_v2, %v4591_v53  ;;  %v1595_v22 = vpack.i.b16 %v1594_v4, %v1593_v17  ;;  %v1693_v41 = vrot.slane %v1679_v21, %v4591_v53 }
 0x267   : > { %v1642_v26 = vrot.slane %v1628_v19, %v4591_v53  ;;  %v1643_v27 = vcombine.low %v1620_v18, %v1635_v20  ;;  %v1644_v28 = vcombine.high %v1620_v18, %v1635_v20  ;;  %v1694_v31 = vcombine.high %v1595_v22, %v4589_v50 }
 0x268   : > { %v1701_v32 = vrot.slane %v1595_v22, %v4591_v53 }
 0x269   : > { %v1651_v33 = vrot.slane %v1643_v27, %v4602_v9  ;;  %v1658_v34 = vrot.slane %v1644_v28, %v4602_v9  ;;  %v1659_v39 = vcombine.low %v1627_v25, %v1642_v26  ;;  %v1660_v40 = vcombine.high %v1627_v25, %v1642_v26 }
 0x26a   : > { %v1708_v37 = vrot.slane %v1694_v31, %v4591_v53  ;;  %v1709_v57 = vcombine.low %v1686_v29, %v1701_v32  ;;  %v1710_v7 = vcombine.high %v1686_v29, %v1701_v32 }
 0x26b   : > { %v1667_v45 = vrot.slane %v1659_v39, %v4602_v9  ;;  %v1674_v46 = vrot.slane %v1660_v40, %v4602_v9  ;;  %v1877_v35 = vcombine.low %v1651_v33, %v1658_v34  ;;  %v3720_v51 = vcombine.high %v1651_v33, %v1658_v34 }
 0x26c   : > { %v1717_v54 = vrot.slane %v1709_v57, %v4602_v9  ;;  %v1724_v36 = vrot.slane %v1710_v7, %v4602_v9  ;;  %v1725_v38 = vcombine.low %v1693_v41, %v1708_v37  ;;  %v1726_v47 = vcombine.high %v1693_v41, %v1708_v37 }
 0x26d   : > { %v1884_v55 = vrot.slane %v1877_v35, %v4591_v53  ;;  %v1892_v56 = vrot.slane %v3720_v51, %v4591_v53  ;;  %v1893_v58 = vcombine.low %v1667_v45, %v1674_v46  ;;  %v3721_v61 = vcombine.high %v1667_v45, %v1674_v46 }
 0x26e   : > { %v1733_v62 = vrot.slane %v1725_v38, %v4602_v9  ;;  %v1740_v59 = vrot.slane %v1726_v47, %v4602_v9  ;;  %v1927_v60 = vcombine.low %v1717_v54, %v1724_v36  ;;  %v3722_v63 = vcombine.high %v1717_v54, %v1724_v36 }
 0x26f   : > { %v1900_v0 = vrot.slane %v1893_v58, %v4591_v53  ;;  %v1908_v1 = vrot.slane %v3721_v61, %v4591_v53  ;;  %v1909_v8 = vcombine.low %v1884_v55, %v1892_v56 }
 0x270   : > { %v1934_v10 = vrot.slane %v1927_v60, %v4591_v53  ;;  %v1942_v11 = vrot.slane %v3722_v63, %v4591_v53  ;;  %v1943_v12 = vcombine.low %v1733_v62, %v1740_v59  ;;  %v3723_v13 = vcombine.high %v1733_v62, %v1740_v59 }
 0x271   : > { %v1917_v14 = vcombine.low %v1900_v0, %v1908_v1  ;;  %v1916_v48 = vrot.slane %v1909_v8, %v4602_v9 }
 0x272   : > { %v1950_v5 = vrot.slane %v1943_v12, %v4591_v53  ;;  %v1958_v15 = vrot.slane %v3723_v13, %v4591_v53  ;;  %v1959_v24 = vcombine.low %v1934_v10, %v1942_v11 }
 0x273   : > { %v1924_v6 = vrot.slane %v1917_v14, %v4602_v9 }
 0x274   : > { %v1967_v16 = vcombine.low %v1950_v5, %v1958_v15  ;;  %v1966_v2 = vrot.slane %v1959_v24, %v4602_v9 }
 0x275   : > { %v1925_v42 = vcombine.low %v1916_v48, %v1924_v6  ;;  %v4828_v43 = vcombine.high %v1916_v48, %v1924_v6 }
 0x276   : > { %v1974_v4 = vrot.slane %v1967_v16, %v4602_v9 }
 0x277   : > { %v2081_v19 = vshrl.u32 %v1925_v42, 16  ;;  %v2089_v20 = vshrl.u32 %v4828_v43, 16 }
 0x278   : > { %v1975_v17 = vcombine.low %v1966_v2, %v1974_v4  ;;  %v4832_v18 = vcombine.high %v1966_v2, %v1974_v4 }
 0x27a   : > { %v2079_v21 = vpack.i.b16 %v1975_v17, %v1925_v42  ;;  %v2082_v22 = vshrl.u32 %v1975_v17, 16  ;;  %v2087_v25 = vpack.i.b16 %v4832_v18, %v4828_v43  ;;  %v2090_v26 = vshrl.u32 %v4832_v18, 16 }
 0x27c   : > { %3884 = vmatpush3.bf16.msra.mxu0 %v2079_v21  ;;  %v2083_v27 = vpack.i.b16 %v2082_v22, %v2081_v19  ;;  %v4838_v28 = vpack.i.b16 %v2090_v26, %v2089_v20 }
 0x27d   : > { %3895 = vmatprep.subr.bf16.mxu0 %v4295_v3 }
 0x27e   : > { %3890 = vmatpush3.bf16.msra.mxu1 %v2083_v27 }
 0x27f   : > { %3901 = vmatprep.subr.bf16.mxu1 %v4295_v3 }
 0x2f3   : > { %v2150_v29 = vpop.f32.mrb[0].mxu0 }
 0x2f4   : > { %v3839_v31 = vpop.f32.mrb[1].mxu0  ;;  %v2479_v32 = vsel %vm2478_vm5, %v2150_v29, -inf }
 0x2f5   : > { %v2196_v33 = vpop.f32.mrb[8].mxu1  ;;  %2480 = vmax.xlane.f32.xlu1 %v2479_v32  ;;  %v2153_v34 = vpop.f32.mrb[2].mxu0 }
 0x2f6   : > { %v3840_v39 = vpop.f32.mrb[3].mxu0  ;;  %v3845_v40 = vpop.f32.mrb[9].mxu1  ;;  %v2482_v41 = vsel %vm2478_vm5, %v2196_v33, -inf }
 0x2f7   : > { %2483 = vmax.xlane.f32.xlu0 %v2482_v41  ;;  %v2199_v37 = vpop.f32.mrb[10].mxu1 }
 0x2f8   : > { %v3846_v57 = vpop.f32.mrb[11].mxu1 }
 0x2fb   : > { %v2242_v7 = vpop.f32.mrb[4].mxu0 }
 0x2fc   : > { %v3851_v45 = vpop.f32.mrb[5].mxu0  ;;  %v2485_v46 = vsel %vm2478_vm5, %v2242_v7, -inf }
 0x2fd   : > { %v2288_v35 = vpop.f32.mrb[12].mxu1  ;;  %2486 = vmax.xlane.f32.xlu0 %v2485_v46  ;;  %v2245_v51 = vpop.f32.mrb[6].mxu0 }
 0x2fe   : > { %v3852_v54 = vpop.f32.mrb[7].mxu0  ;;  %v3857_v36 = vpop.f32.mrb[13].mxu1  ;;  %v2488_v38 = vsel %vm2478_vm5, %v2288_v35, -inf }
 0x2ff   : > { %v2291_v47 = vpop.f32.mrb[14].mxu1  ;;  %2489 = vmax.xlane.f32.xlu1 %v2488_v38 }
 0x300   : > { %v3858_v55 = vpop.f32.mrb[15].mxu1 }
 0x303   : > { %v4846_v56 = vpop.f32.mrb[8].mxu0 }
 0x304   : > { %v3863_v58 = vpop.f32.mrb[9].mxu0  ;;  %v2491_v61 = vsel %vm2478_vm5, %v4846_v56, -inf }
 0x305   : > { %v2380_v62 = vpop.f32.mrb[16].mxu1  ;;  %2492 = vmax.xlane.f32.xlu0 %v2491_v61  ;;  %v2337_v59 = vpop.f32.mrb[10].mxu0 }
 0x306   : > { %v3864_v60 = vpop.f32.mrb[11].mxu0  ;;  %v3869_v63 = vpop.f32.mrb[17].mxu1  ;;  %v2494_v0 = vsel %vm2478_vm5, %v2380_v62, -inf }
 0x307   : > { %v2383_v1 = vpop.f32.mrb[18].mxu1  ;;  %2495 = vmax.xlane.f32.xlu1 %v2494_v0 }
 0x308   : > { %v3870_v8 = vpop.f32.mrb[19].mxu1 }
 0x30b   : > { %v2426_v10 = vpop.f32.mrb[12].mxu0 }
 0x30c   : > { %v3875_v11 = vpop.f32.mrb[13].mxu0  ;;  %v2497_v12 = vsel %vm2478_vm5, %v2426_v10, -inf }
 0x30d   : > { %v2472_v13 = vpop.f32.mrb[20].mxu1  ;;  %2498 = vmax.xlane.f32.xlu0 %v2497_v12  ;;  %v2429_v14 = vpop.f32.mrb[14].mxu0 }
 0x30e   : > { %v3876_v5 = vpop.f32.mrb[15].mxu0  ;;  %v3881_v15 = vpop.f32.mrb[21].mxu1  ;;  %v2500_v24 = vsel %vm2478_vm5, %v2472_v13, -inf }
 0x30f   : > { %v2475_v48 = vpop.f32.mrb[22].mxu1  ;;  %2501 = vmax.xlane.f32.xlu1 %v2500_v24 }
 0x310   : > { %v3882_v6 = vpop.f32.mrb[23].mxu1 }
 0x320   : > { %1571 = vrot.lane.b32.xlu1 %v4614_v23, %s4300_s26 }
 0x323   : > { %1567 = vrot.lane.b32.xlu0 %v4575_v30, %s4300_s26 }
 0x382   : > { %v2481_v16 = vpop.xlane.xlu1 %2480 }
 0x383   : > { %v2503_v42 = vsub.f32 %v2150_v29, %v2481_v16 }
 0x384   : > { %v2484_v2 = vpop.xlane.xlu0 %2483 }
 0x385   : > { %v2511_v4 = vmul.f32 1.442695, %v2503_v42  ;;  %v2504_v17 = vsub.f32 %v2196_v33, %v2484_v2 }
 0x387   : > { %4063 = vpow2.f32 %v2511_v4  ;;  %v2513_v19 = vmul.f32 1.442695, %v2504_v17 }
 0x389   : > { %4065 = vpow2.f32 %v2513_v19 }
 0x38a   : > { %v2487_v20 = vpop.xlane.xlu0 %2486 }
 0x38b   : > { %v2505_v21 = vsub.f32 %v2242_v7, %v2487_v20 }
 0x38c   : > { %v2490_v22 = vpop.xlane.xlu1 %2489 }
 0x38d   : > { %v2515_v26 = vmul.f32 1.442695, %v2505_v21  ;;  %v2506_v27 = vsub.f32 %v2288_v35, %v2490_v22 }
 0x38f   : > { %4067 = vpow2.f32 %v2515_v26  ;;  %v2517_v31 = vmul.f32 1.442695, %v2506_v27 }
 0x391   : > { %v4064_v32 = vpop.eup %4063  ;;  %4069 = vpow2.f32 %v2517_v31 }
 0x392   : > { %v2527_v23 = vsel %vm2478_vm5, %v4064_v32, 0.0  ;;  %v2493_v41 = vpop.xlane.xlu0 %2492 }
 0x393   : > { %v4066_v30 = vpop.eup %4065  ;;  %2528 = vadd.xlane.f32.xlu1 %v2527_v23  ;;  %v2507_v45 = vsub.f32 %v4846_v56, %v2493_v41 }
 0x394   : > { %v2530_v29 = vsel %vm2478_vm5, %v4066_v30, 0.0  ;;  %v2496_v37 = vpop.xlane.xlu1 %2495 }
 0x395   : > { %2531 = vadd.xlane.f32.xlu0 %v2530_v29  ;;  %v2508_v57 = vsub.f32 %v2380_v62, %v2496_v37  ;;  %v2519_v54 = vmul.f32 1.442695, %v2507_v45 }
 0x397   : > { %v2521_v35 = vmul.f32 1.442695, %v2508_v57 }
 0x399   : > { %v4859_v33 = vpop.eup %4067  ;;  %4071 = vpow2.f32 %v2521_v35 }
 0x39a   : > { %v2533_v34 = vsel %vm2478_vm5, %v4859_v33, 0.0  ;;  %v2499_v7 = vpop.xlane.xlu0 %2498  ;;  %4073 = vpow2.f32 %v2519_v54 }
 0x39b   : > { %v4863_v39 = vpop.eup %4069  ;;  %2534 = vadd.xlane.f32.xlu0 %v2533_v34  ;;  %v2509_v51 = vsub.f32 %v2426_v10, %v2499_v7 }
 0x39c   : > { %v2536_v40 = vsel %vm2478_vm5, %v4863_v39, 0.0  ;;  %v2502_v46 = vpop.xlane.xlu1 %2501 }
 0x39d   : > { %2537 = vadd.xlane.f32.xlu1 %v2536_v40  ;;  %v2510_v36 = vsub.f32 %v2472_v13, %v2502_v46  ;;  %v2523_v38 = vmul.f32 1.442695, %v2509_v51 }
 0x39e   : > { %v1568_v63 = vpop.permute.xlu0 %1567 }
 0x39f   : > { %v2525_v47 = vmul.f32 1.442695, %v2510_v36  ;;  %4075 = vpow2.f32 %v2523_v38  ;;  %v1601_v11 = vshrl.u32 %v1568_v63, 16 }
 0x3a0   : > { %v1572_v60 = vpop.permute.xlu1 %1571 }
 0x3a1   : > { %4077 = vpow2.f32 %v2525_v47  ;;  %v1602_v8 = vshrl.u32 %v1572_v60, 16  ;;  %v1599_v12 = vpack.i.b16 %v1572_v60, %v1568_v63 }
 0x3a3   : > { %v1603_v5 = vpack.i.b16 %v1602_v8, %v1601_v11  ;;  %v1745_v6 = vcombine.high %v1599_v12, %v4589_v50  ;;  %v1752_v20 = vrot.slane %v1599_v12, %v4591_v53 }
 0x3a5   : > { %v1811_v21 = vcombine.high %v1603_v5, %v4589_v50  ;;  %v1818_v23 = vrot.slane %v1603_v5, %v4591_v53 }
 0x3a7   : > { %v1825_v43 = vrot.slane %v1811_v21, %v4591_v53 }
 0x3ae   : > { %1575 = vrot.lane.b32.xlu1 %v4636_v44, %s4300_s26  ;;  %v4872_v44 = vpop.eup %4071 }
 0x3af   : > { %v2542_v55 = vsel %vm2478_vm5, %v4872_v44, 0.0 }
 0x3b1   : > { %1579 = vrot.lane.b32.xlu0 %v4644_v52, %s4300_s26  ;;  %v4874_v52 = vpop.eup %4073 }
 0x3b2   : > { %v4878_v58 = vpop.eup %4075  ;;  %v2539_v56 = vsel %vm2478_vm5, %v4874_v52, 0.0 }
 0x3b3   : > { %v4882_v61 = vpop.eup %4077  ;;  %v2545_v62 = vsel %vm2478_vm5, %v4878_v58, 0.0 }
 0x3b4   : > { %v2548_v59 = vsel %vm2478_vm5, %v4882_v61, 0.0 }
 0x3d0   : > { %2543 = vadd.xlane.f32.xlu0 %v2542_v55 }
 0x3d2   : > { %2540 = vadd.xlane.f32.xlu1 %v2539_v56 }
 0x3d4   : > { %2546 = vadd.xlane.f32.xlu0 %v2545_v62 }
 0x3d6   : > { %2549 = vadd.xlane.f32.xlu1 %v2548_v59 }
 0x420   : > { %v2529_v0 = vpop.xlane.xlu1 %2528 }
 0x421   : > { %4079 = vrcp.f32 %v2529_v0 }
 0x422   : > { %v2532_v1 = vpop.xlane.xlu0 %2531 }
 0x423   : > { %4081 = vrcp.f32 %v2532_v1 }
 0x428   : > { %v2535_v10 = vpop.xlane.xlu0 %2534 }
 0x429   : > { %4083 = vrcp.f32 %v2535_v10 }
 0x42a   : > { %v2538_v13 = vpop.xlane.xlu1 %2537 }
 0x42b   : > { %v4080_v14 = vpop.eup %4079  ;;  %4085 = vrcp.f32 %v2538_v13 }
 0x42c   : > { %v2559_v15 = vmul.f32 %v4080_v14, %v4064_v32  ;;  %v1580_v24 = vpop.permute.xlu0 %1579  ;;  %v1759_v32 = vrot.slane %v1745_v6, %v4591_v53 }
 0x42d   : > { %v4082_v48 = vpop.eup %4081  ;;  %v1610_v4 = vshrl.u32 %v1580_v24, 16 }
 0x42e   : > { %v2560_v16 = vmul.f32 %v4082_v48, %v4066_v30  ;;  %v1576_v42 = vpop.permute.xlu1 %1575  ;;  %v2567_v2 = vpack.c.bf16 %v2559_v15, %v2559_v15 }
 0x42f   : > { %v1607_v17 = vpack.i.b16 %v1580_v24, %v1576_v42  ;;  %v1609_v19 = vshrl.u32 %v1576_v42, 16 }
 0x430   : > { %3886 = vmatmul.mubr.msk.bf16.vlgmr.msra.gmra.mrb[16].mxu0 %vm2478_vm5, %v2567_v2  ;;  %v2568_v22 = vpack.c.bf16 %v2560_v16, %v2560_v16 }
 0x431   : > { %v1611_v26 = vpack.i.b16 %v1610_v4, %v1609_v19  ;;  %v1760_v27 = vcombine.high %v1607_v17, %v4589_v50  ;;  %v1767_v31 = vrot.slane %v1607_v17, %v4591_v53  ;;  %3896 = vmatpush3.bf16.msra.mxu0 %v2087_v25  ;;  %3897 = vmatprep.mubr.msk.bf16.mxu0 %vm4296_vm1, %v4295_v3 }
 0x432   : > { %3892 = vmatmul.mubr.msk.bf16.vlgmr.msra.gmra.mrb[24].mxu1 %vm2478_vm5, %v2568_v22  ;;  %3907 = vmatprep.subr.bf16.mxu0 %v4295_v3 }
 0x433   : > { %v4084_v30 = vpop.eup %4083  ;;  %v1774_v29 = vrot.slane %v1760_v27, %v4591_v53  ;;  %v1775_v34 = vcombine.low %v1752_v20, %v1767_v31  ;;  %v1776_v40 = vcombine.high %v1752_v20, %v1767_v31  ;;  %v1826_v41 = vcombine.high %v1611_v26, %v4589_v50  ;;  %3902 = vmatpush3.bf16.msra.mxu1 %v4838_v28 }
 0x434   : > { %v2561_v18 = vmul.f32 %v4084_v30, %v4859_v33  ;;  %v1833_v25 = vrot.slane %v1611_v26, %v4591_v53  ;;  %3903 = vmatprep.mubr.msk.bf16.mxu1 %vm4296_vm1, %v4295_v3  ;;  %3913 = vmatprep.subr.bf16.mxu1 %v4295_v3 }
 0x435   : > { %v4086_v37 = vpop.eup %4085  ;;  %v1783_v57 = vrot.slane %v1775_v34, %v4602_v9  ;;  %v1790_v7 = vrot.slane %v1776_v40, %v4602_v9  ;;  %v1791_v45 = vcombine.low %v1759_v32, %v1774_v29  ;;  %v1792_v50 = vcombine.high %v1759_v32, %v1774_v29 }
 0x436   : > { %v2562_v28 = vmul.f32 %v4086_v37, %v4863_v39  ;;  %v1840_v46 = vrot.slane %v1826_v41, %v4591_v53  ;;  %v1841_v35 = vcombine.low %v1818_v23, %v1833_v25  ;;  %v1842_v33 = vcombine.high %v1818_v23, %v1833_v25 }
 0x437   : > { %v1799_v51 = vrot.slane %v1791_v45, %v4602_v9  ;;  %v1806_v54 = vrot.slane %v1792_v50, %v4602_v9  ;;  %v1977_v36 = vcombine.low %v1783_v57, %v1790_v7  ;;  %v3724_v38 = vcombine.high %v1783_v57, %v1790_v7 }
 0x438   : > { %v1849_v47 = vrot.slane %v1841_v35, %v4602_v9  ;;  %v1856_v55 = vrot.slane %v1842_v33, %v4602_v9  ;;  %v1857_v56 = vcombine.low %v1825_v43, %v1840_v46  ;;  %v1858_v62 = vcombine.high %v1825_v43, %v1840_v46 }
 0x439   : > { %v1984_v59 = vrot.slane %v1977_v36, %v4591_v53  ;;  %v1992_v39 = vrot.slane %v3724_v38, %v4591_v53  ;;  %v1993_v60 = vcombine.low %v1799_v51, %v1806_v54  ;;  %v3725_v63 = vcombine.high %v1799_v51, %v1806_v54 }
 0x43a   : > { %v1865_v0 = vrot.slane %v1857_v56, %v4602_v9  ;;  %v1872_v1 = vrot.slane %v1858_v62, %v4602_v9  ;;  %v2027_v8 = vcombine.low %v1849_v47, %v1856_v55  ;;  %v3726_v10 = vcombine.high %v1849_v47, %v1856_v55 }
 0x43b   : > { %v2000_v11 = vrot.slane %v1993_v60, %v4591_v53  ;;  %v2008_v12 = vrot.slane %v3725_v63, %v4591_v53  ;;  %v2569_v13 = vpack.c.bf16 %v2561_v18, %v2561_v18  ;;  %v2570_v14 = vpack.c.bf16 %v2562_v28, %v2562_v28 }
 0x43c   : > { %v2034_v5 = vrot.slane %v2027_v8, %v4591_v53  ;;  %v2042_v15 = vrot.slane %v3726_v10, %v4591_v53  ;;  %v2043_v24 = vcombine.low %v1865_v0, %v1872_v1  ;;  %v3727_v48 = vcombine.high %v1865_v0, %v1872_v1 }
 0x43d   : > { %3898 = vmatmul.mubr.msk.bf16.vlgmr.msra.gmra.mrb[20].mxu0 %vm2478_vm5, %v2569_v13  ;;  %3904 = vmatmul.mubr.msk.bf16.vlgmr.msra.gmra.mrb[28].mxu1 %vm2478_vm5, %v2570_v14  ;;  %v2009_v6 = vcombine.low %v1984_v59, %v1992_v39  ;;  %v2017_v16 = vcombine.low %v2000_v11, %v2008_v12 }
 0x43e   : > { %v2050_v42 = vrot.slane %v2043_v24, %v4591_v53  ;;  %v2058_v2 = vrot.slane %v3727_v48, %v4591_v53  ;;  %v2059_v4 = vcombine.low %v2034_v5, %v2042_v15  ;;  %3915 = vmatprep.mubr.msk.bf16.mxu1 %vm4296_vm1, %v4295_v3  ;;  %3909 = vmatprep.mubr.msk.bf16.mxu0 %vm4296_vm1, %v4295_v3 }
 0x43f   : > { %v2024_v17 = vrot.slane %v2017_v16, %v4602_v9  ;;  %v2016_v19 = vrot.slane %v2009_v6, %v4602_v9 }
 0x440   : > { %v2067_v20 = vcombine.low %v2050_v42, %v2058_v2  ;;  %v2066_v22 = vrot.slane %v2059_v4, %v4602_v9 }
 0x441   : > { %v2025_v21 = vcombine.low %v2016_v19, %v2024_v17  ;;  %v2026_v18 = vcombine.high %v2016_v19, %v2024_v17 }
 0x442   : > { %v2074_v26 = vrot.slane %v2067_v20, %v4602_v9 }
 0x443   : > { %v2097_v32 = vshrl.u32 %v2025_v21, 16  ;;  %v2105_v45 = vshrl.u32 %v2026_v18, 16 }
 0x444   : > { %v2075_v27 = vcombine.low %v2066_v22, %v2074_v26  ;;  %v2076_v43 = vcombine.high %v2066_v22, %v2074_v26 }
 0x446   : > { %v2095_v31 = vpack.i.b16 %v2075_v27, %v2025_v21  ;;  %v2098_v23 = vshrl.u32 %v2075_v27, 16  ;;  %v2106_v37 = vshrl.u32 %v2076_v43, 16  ;;  %v2103_v54 = vpack.i.b16 %v2076_v43, %v2026_v18 }
 0x448   : > { %3908 = vmatpush3.bf16.msra.mxu0 %v2095_v31  ;;  %v2099_v30 = vpack.i.b16 %v2098_v23, %v2097_v32  ;;  %v2107_v46 = vpack.i.b16 %v2106_v37, %v2105_v45 }
 0x449   : > { %3919 = vmatprep.subr.bf16.mxu0 %v4295_v3 }
 0x44a   : > { %3914 = vmatpush3.bf16.msra.mxu1 %v2099_v30 }
 0x44b   : > { %3925 = vmatprep.subr.bf16.mxu1 %v4295_v3 }
 0x45d   : > { %v2544_v29 = vpop.xlane.xlu0 %2543 }
 0x45e   : > { %4087 = vrcp.f32 %v2544_v29 }
 0x45f   : > { %v2541_v34 = vpop.xlane.xlu1 %2540 }
 0x460   : > { %4089 = vrcp.f32 %v2541_v34 }
 0x461   : > { %v2547_v40 = vpop.xlane.xlu0 %2546 }
 0x462   : > { %4091 = vrcp.f32 %v2547_v40 }
 0x463   : > { %v2550_v41 = vpop.xlane.xlu1 %2549 }
 0x464   : > { %4093 = vrcp.f32 %v2550_v41 }
 0x468   : > { %v4088_v25 = vpop.eup %4087 }
 0x469   : > { %v2564_v57 = vmul.f32 %v4088_v25, %v4872_v44 }
 0x46a   : > { %v4090_v7 = vpop.eup %4089 }
 0x46b   : > { %v2563_v50 = vmul.f32 %v4090_v7, %v4874_v52  ;;  %v2572_v28 = vpack.c.bf16 %v2564_v57, %v2564_v57 }
 0x46c   : > { %v4092_v35 = vpop.eup %4091 }
 0x46d   : > { %3916 = vmatmul.mubr.msk.bf16.vlgmr.msra.gmra.mrb[32].mxu1 %vm2478_vm5, %v2572_v28  ;;  %v2571_v33 = vpack.c.bf16 %v2563_v50, %v2563_v50  ;;  %v2565_v44 = vmul.f32 %v4092_v35, %v4878_v58 }
 0x46e   : > { %v4094_v51 = vpop.eup %4093  ;;  %3926 = vmatpush3.bf16.msra.mxu1 %v2107_v46  ;;  %3927 = vmatprep.mubr.msk.bf16.mxu1 %vm4296_vm1, %v4295_v3 }
 0x46f   : > { %v2566_v36 = vmul.f32 %v4094_v51, %v4882_v61  ;;  %3910 = vmatmul.mubr.msk.bf16.vlgmr.msra.gmra.mrb[24].mxu0 %vm2478_vm5, %v2571_v33  ;;  %3939 = vmatprep.subr.bf16.mxu1 %v4295_v3  ;;  %v2573_v38 = vpack.c.bf16 %v2565_v44, %v2565_v44  ;;  %v4055_v61 = vld [vmem:[#allocation8] sm:$0xff]  }
 0x470   : > { %3920 = vmatpush3.bf16.msra.mxu0 %v2103_v54  ;;  %3921 = vmatprep.mubr.msk.bf16.mxu0 %vm4296_vm1, %v4295_v3 }
 0x471   : > { %3931 = vmatprep.subr.bf16.mxu0 %v4295_v3  ;;  %v2574_v52 = vpack.c.bf16 %v2566_v36, %v2566_v36 }
 0x475   : > { %3928 = vmatmul.mubr.msk.bf16.vlgmr.msra.gmra.mrb[36].mxu1 %vm2478_vm5, %v2574_v52 }
 0x476   : > { %3943 = vmatprep.mubr.msk.bf16.mxu1 %vm4296_vm1, %v4295_v3 }
 0x477   : > { %3922 = vmatmul.mubr.msk.bf16.vlgmr.msra.gmra.mrb[28].mxu0 %vm2478_vm5, %v2573_v38 }
 0x478   : > { %3935 = vmatprep.mubr.msk.bf16.mxu0 %vm4296_vm1, %v4295_v3  ;;  %3932 = vmatpush3.bf16.msra.mxu0 %v4055_v61 }
 0x479   : > { %3933 = vmatprep.subr.bf16.mxu0 %v4295_v3 }
 0x503   : > { %v2612_v47 = vpop.f32.mrb[16].mxu0 }
 0x504   : > { %v3887_v58 = vpop.f32.mrb[17].mxu0  ;;  %v2919_v63 = vpack.c.bf16 %v2612_v47, %v2612_v47 }
 0x505   : > { %v2615_v55 = vpop.f32.mrb[18].mxu0  ;;  %v2655_v56 = vpop.f32.mrb[24].mxu1 }
 0x506   : > { %v3888_v62 = vpop.f32.mrb[19].mxu0  ;;  %v3893_v59 = vpop.f32.mrb[25].mxu1  ;;  %v2953_v0 = vpack.c.bf16 %v2655_v56, %v2655_v56  ;;  %v2926_v15 = vrot.slane %v2919_v63, %v4591_v53 }
 0x507   : > { %v2658_v39 = vpop.f32.mrb[26].mxu1 }
 0x508   : > { %v3894_v60 = vpop.f32.mrb[27].mxu1  ;;  %v2960_v24 = vrot.slane %v2953_v0, %v4591_v53 }
 0x510   : > { %v2698_v1 = vpop.f32.mrb[20].mxu0  ;;  %v2741_v8 = vpop.f32.mrb[28].mxu1 }
 0x511   : > { %v2927_v10 = vpack.c.bf16 %v2698_v1, %v2698_v1  ;;  %v3899_v11 = vpop.f32.mrb[21].mxu0  ;;  %v2961_v12 = vpack.c.bf16 %v2741_v8, %v2741_v8  ;;  %v3905_v13 = vpop.f32.mrb[29].mxu1 }
 0x512   : > { %v2701_v14 = vpop.f32.mrb[22].mxu0  ;;  %v2744_v5 = vpop.f32.mrb[30].mxu1 }
 0x513   : > { %v2934_v48 = vrot.slane %v2927_v10, %v4591_v53  ;;  %v2968_v6 = vrot.slane %v2961_v12, %v4591_v53  ;;  %v3900_v16 = vpop.f32.mrb[23].mxu0  ;;  %v3906_v42 = vpop.f32.mrb[31].mxu1 }
 0x515   : > { %v2935_v2 = vcombine.low %v2926_v15, %v2934_v48  ;;  %v2936_v4 = vcombine.high %v2926_v15, %v2934_v48  ;;  %v2969_v17 = vcombine.low %v2960_v24, %v2968_v6  ;;  %v2970_v19 = vcombine.high %v2960_v24, %v2968_v6 }
 0x517   : > { %v2943_v20 = vrot.slane %v2935_v2, %v4602_v9  ;;  %v2950_v21 = vrot.slane %v2936_v4, %v4602_v9  ;;  %v2977_v22 = vrot.slane %v2969_v17, %v4602_v9  ;;  %v2984_v26 = vrot.slane %v2970_v19, %v4602_v9 }
 0x519   : > { %v2951_v27 = vcombine.high %v2943_v20, %v4303_v49  ;;  %v2952_v31 = vcombine.high %v2950_v21, %v4303_v49  ;;  %v3059_v32 = vshrl.u32 %v2943_v20, 16  ;;  %v2985_v23 = vcombine.high %v2977_v22, %v4303_v49 }
 0x51a   : > { %v2986_v30 = vcombine.high %v2984_v26, %v4303_v49  ;;  %v3057_v29 = vpack.i.b16 %v2977_v22, %v2943_v20  ;;  %v3060_v34 = vshrl.u32 %v2977_v22, 16  ;;  %v3075_v41 = vshrl.u32 %v2950_v21, 16 }
 0x51b   : > { %v3067_v40 = vshrl.u32 %v2951_v27, 16  ;;  %v3073_v43 = vpack.i.b16 %v2984_v26, %v2950_v21  ;;  %v3076_v18 = vshrl.u32 %v2984_v26, 16  ;;  %v3065_v37 = vpack.i.b16 %v2985_v23, %v2951_v27 }
 0x51c   : > { %v3061_v25 = vpack.i.b16 %v3060_v34, %v3059_v32  ;;  %v3068_v57 = vshrl.u32 %v2985_v23, 16  ;;  %v3081_v7 = vpack.i.b16 %v2986_v30, %v2952_v31  ;;  %v3083_v45 = vshrl.u32 %v2952_v31, 16 }
 0x51d   : > { %v3077_v50 = vpack.i.b16 %v3076_v18, %v3075_v41  ;;  %v3084_v28 = vshrl.u32 %v2986_v30, 16  ;;  %v3119_v46 = vcombine.low %v3057_v29, %v3073_v43 }
 0x51e   : > { %v3069_v35 = vpack.i.b16 %v3068_v57, %v3067_v40  ;;  %v3127_v33 = vcombine.low %v3065_v37, %v3081_v7 }
 0x51f   : > { %v3085_v51 = vpack.i.b16 %v3084_v28, %v3083_v45  ;;  %v3169_v54 = vcombine.low %v3061_v25, %v3077_v50  ;;  %v3126_v36 = vrot.slane %v3119_v46, %v4591_v53 }
 0x520   : > { %v3134_v44 = vrot.slane %v3127_v33, %v4591_v53 }
 0x521   : > { %v3177_v52 = vcombine.low %v3069_v35, %v3085_v51  ;;  %v4978_v61 = vrot.slane %v3169_v54, %v4591_v53 }
 0x522   : > { %v4975_v38 = vcombine.low %v3126_v36, %v3134_v44 }
 0x523   : > { %v4981_v47 = vrot.slane %v3177_v52, %v4591_v53 }
 0x525   : > { %v3201_v58 = vcombine.low %v4978_v61, %v4981_v47 }
 0x540   : > { %v2827_v55 = vpop.f32.mrb[32].mxu1 }
 0x541   : > { %v3917_v56 = vpop.f32.mrb[33].mxu1  ;;  %v3021_v1 = vpack.c.bf16 %v2827_v55, %v2827_v55 }
 0x542   : > { %v2784_v62 = vpop.f32.mrb[24].mxu0  ;;  %v2830_v59 = vpop.f32.mrb[34].mxu1 }
 0x543   : > { %v3911_v39 = vpop.f32.mrb[25].mxu0  ;;  %v3918_v60 = vpop.f32.mrb[35].mxu1  ;;  %v2987_v10 = vpack.c.bf16 %v2784_v62, %v2784_v62  ;;  %v3028_v5 = vrot.slane %v3021_v1, %v4591_v53  ;;  %v4056_v62 = vld [vmem:[#allocation8 + $0x8] sm:$0xff]  }
 0x544   : > { %v2787_v63 = vpop.f32.mrb[26].mxu0  ;;  %v3158_v60 = vrot.slane %v4975_v38, %v4602_v9  ;;  %3934 = vmatpush3.bf16.msra.mxu0 %v4056_v62  ;;  %v5033_v62 = vld [vmem:[%s5124_s13] ss:$0 sm:$0xff] }
 0x545   : > { %v3912_v0 = vpop.f32.mrb[27].mxu0  ;;  %v2994_v42 = vrot.slane %v2987_v10, %v4591_v53  ;;  %3947 = vmatprep.subr.bf16.mxu0 %v4295_v3  ;;  %v3208_v10 = vrot.slane %v3201_v58, %v4602_v9 }
 0x548   : > { %v2913_v8 = vpop.f32.mrb[36].mxu1 }
 0x549   : > { %v3029_v11 = vpack.c.bf16 %v2913_v8, %v2913_v8  ;;  %v3929_v12 = vpop.f32.mrb[37].mxu1 }
 0x54a   : > { %v2870_v13 = vpop.f32.mrb[28].mxu0  ;;  %v2916_v14 = vpop.f32.mrb[38].mxu1 }
 0x54b   : > { %v3036_v15 = vrot.slane %v3029_v11, %v4591_v53  ;;  %v2995_v24 = vpack.c.bf16 %v2870_v13, %v2870_v13  ;;  %v3923_v48 = vpop.f32.mrb[29].mxu0  ;;  %v3930_v6 = vpop.f32.mrb[39].mxu1 }
 0x54c   : > { %v2873_v16 = vpop.f32.mrb[30].mxu0 }
 0x54d   : > { %v3037_v2 = vcombine.low %v3028_v5, %v3036_v15  ;;  %v3038_v4 = vcombine.high %v3028_v5, %v3036_v15  ;;  %v3002_v17 = vrot.slane %v2995_v24, %v4591_v53  ;;  %v3924_v19 = vpop.f32.mrb[31].mxu0 }
 0x54f   : > { %v3045_v20 = vrot.slane %v3037_v2, %v4602_v9  ;;  %v3052_v21 = vrot.slane %v3038_v4, %v4602_v9  ;;  %v3003_v22 = vcombine.low %v2994_v42, %v3002_v17  ;;  %v3004_v26 = vcombine.high %v2994_v42, %v3002_v17  ;;  %v3744_v2 = vld [vmem:[%s5118_s7] ss:$0 sm:$0xff] }
 0x551   : > { %v3053_v27 = vcombine.high %v3045_v20, %v4303_v49  ;;  %v3011_v31 = vrot.slane %v3003_v22, %v4602_v9  ;;  %v3018_v32 = vrot.slane %v3004_v26, %v4602_v9  ;;  %v3054_v23 = vcombine.high %v3052_v21, %v4303_v49  ;;  %v4107_v26 = vld [vmem:[#allocation2] sm:$0xff] }
 0x552   : > { %v3092_v30 = vshrl.u32 %v3045_v20, 16  ;;  %v3108_v18 = vshrl.u32 %v3052_v21, 16 }
 0x553   : > { %v3019_v29 = vcombine.high %v3011_v31, %v4303_v49  ;;  %v3020_v34 = vcombine.high %v3018_v32, %v4303_v49  ;;  %v3089_v40 = vpack.i.b16 %v3045_v20, %v3011_v31  ;;  %v3091_v41 = vshrl.u32 %v3011_v31, 16 }
 0x554   : > { %v3100_v43 = vshrl.u32 %v3053_v27, 16  ;;  %v3105_v25 = vpack.i.b16 %v3052_v21, %v3018_v32  ;;  %v3107_v37 = vshrl.u32 %v3018_v32, 16  ;;  %v3116_v28 = vshrl.u32 %v3054_v23, 16  ;;  %v4108_v32 = vld [vmem:[#allocation2 + $0x8] sm:$0xff] }
 0x555   : > { %v3093_v57 = vpack.i.b16 %v3092_v30, %v3091_v41  ;;  %v3097_v7 = vpack.i.b16 %v3053_v27, %v3019_v29  ;;  %v3099_v45 = vshrl.u32 %v3019_v29, 16  ;;  %v3113_v50 = vpack.i.b16 %v3054_v23, %v3020_v34 }
 0x556   : > { %v3109_v46 = vpack.i.b16 %v3108_v18, %v3107_v37  ;;  %v3115_v35 = vshrl.u32 %v3020_v34, 16  ;;  %v3135_v33 = vcombine.low %v3089_v40, %v3105_v25 }
 0x557   : > { %v3101_v51 = vpack.i.b16 %v3100_v43, %v3099_v45  ;;  %v3143_v54 = vcombine.low %v3097_v7, %v3113_v50  ;;  %v4057_v45 = vld [vmem:[#allocation9] sm:$0xff]   ;;  %v4058_v50 = vld [vmem:[#allocation9 + $0x8] sm:$0xff]  }
 0x558   : > { %v3117_v36 = vpack.i.b16 %v3116_v28, %v3115_v35  ;;  %v3185_v44 = vcombine.low %v3093_v57, %v3109_v46  ;;  %v3142_v49 = vrot.slane %v3135_v33, %v4591_v53  ;;  %3940 = vmatpush3.bf16.msra.mxu1 %v4057_v45 }
 0x559   : > { %v3150_v52 = vrot.slane %v3143_v54, %v4591_v53  ;;  %3941 = vmatprep.subr.bf16.mxu1 %v4295_v3 }
 0x55a   : > { %v3193_v55 = vcombine.low %v3101_v51, %v3117_v36  ;;  %v3192_v59 = vrot.slane %v3185_v44, %v4591_v53 }
 0x55b   : > { %v3159_v56 = vcombine.low %v3142_v49, %v3150_v52  ;;  %v5027_v49 = vld [vmem:[%s5123_s12] ss:$0 sm:$0xff] }
 0x55c   : > { %v3200_v39 = vrot.slane %v3193_v55, %v4591_v53  ;;  %3942 = vmatpush3.bf16.msra.mxu1 %v4058_v50 }
 0x55d   : > { %v3166_v63 = vrot.slane %v3159_v56, %v4602_v9 }
 0x55e   : > { %v3209_v0 = vcombine.low %v3192_v59, %v3200_v39 }
 0x55f   : > { %v3168_v1 = vcombine.high %v3158_v60, %v3166_v63  ;;  %v3167_v8 = vcombine.low %v3158_v60, %v3166_v63 }
 0x560   : > { %v3216_v11 = vrot.slane %v3209_v0, %v4602_v9  ;;  %v4059_v0 = vld [vmem:[%s5156_s11] sm:$0xff]  }
 0x561   : > { %v3222_v13 = vshrl.u32 %v3167_v8, 16  ;;  %v3228_v14 = vshrl.u32 %v3168_v1, 16 }
 0x562   : > { %v3218_v12 = vcombine.high %v3208_v10, %v3216_v11  ;;  %v3217_v53 = vcombine.low %v3208_v10, %v3216_v11  ;;  %v4062_v10 = vld [vmem:[%s5156_s11 + $0x18] sm:$0xff]  }
 0x564   : > { %v3227_v38 = vpack.i.b16 %v3218_v12, %v3168_v1  ;;  %v3223_v5 = vshrl.u32 %v3217_v53, 16  ;;  %v3229_v15 = vshrl.u32 %v3218_v12, 16  ;;  %v3221_v24 = vpack.i.b16 %v3217_v53, %v3167_v8  ;;  %v4060_v1 = vld [vmem:[%s5156_s11 + $0x8] sm:$0xff]   ;;  %v4061_v8 = vld [vmem:[%s5156_s11 + $0x10] sm:$0xff]  }
 0x566   : > { %3233 = vrot.lane.b32.xlu1 %v3227_v38, %s4304_s17  ;;  %v3224_v48 = vpack.i.b16 %v3223_v5, %v3222_v13  ;;  %v3230_v6 = vpack.i.b16 %v3229_v15, %v3228_v14  ;;  %s5157_s17 = sld [smem:[#allocation20_spill]] }
 0x568   : > { %3231 = vrot.lane.b32.xlu0 %v3224_v48, %s4305_s14 }
 0x56a   : > { %3235 = vrot.lane.b32.xlu1 %v3230_v6, %s4306_s20 }
 0x56c   : > { %v3750_v11 = vld [vmem:[%s5157_s17] ss:$0 sm:$0xff] }
 0x5d8   : > { %v3234_v61 = vpop.permute.xlu1 %3233 }
 0x5da   : > { %v3232_v47 = vpop.permute.xlu0 %3231 }
 0x5db   : > { %v3239_v9 = vsel %vm2109_vm4, %v3221_v24, %v3232_v47 }
 0x5dc   : > { %v3236_v58 = vpop.permute.xlu1 %3235  ;;  %v3241_v16 = vsel %vm2478_vm5, %v3239_v9, %v3234_v61 }
 0x5dd   : > { %v3244_v42 = vsel %vm3242_vm6, %v3241_v16, %v3236_v58 }
 0x5de   : > { %3936 = vmatmul.mubr.msk.bf16.vlgmr.msra.gmra.mrb[32].mxu0 %vm601_vm2, %v3244_v42 }
 0x5df   : > { %3955 = vmatprep.mubr.msk.bf16.mxu0 %vm4296_vm1, %v4295_v3  ;;  %3948 = vmatpush3.bf16.msra.mxu0 %v4059_v0 }
 0x5e0   : > { %3949 = vmatprep.subr.bf16.mxu0 %v4295_v3 }
 0x5e3   : > { %3950 = vmatpush3.bf16.msra.mxu0 %v4060_v1 }
 0x5e4   : > { %3951 = vmatprep.subr.bf16.mxu0 %v4295_v3 }
 0x5e7   : > { %3952 = vmatpush3.bf16.msra.mxu0 %v4061_v8 }
 0x5e8   : > { %3953 = vmatprep.subr.bf16.mxu0 %v4295_v3 }
 0x5eb   : > { %3954 = vmatpush3.bf16.msra.mxu0 %v4062_v10 }
 0x6b1   : > { %v3304_v4 = vpop.f32.mrb[32].mxu0 }
 0x6b2   : > { %v3305_v17 = vadd.f32 %v3744_v2, %v3304_v4  ;;  %v3937_v19 = vpop.f32.mrb[33].mxu0 }
 0x6b3   : > { %v3307_v20 = vpop.f32.mrb[34].mxu0 }
 0x6b4   : > { %v3308_v21 = vadd.f32 %v3744_v2, %v3307_v20  ;;  %v3938_v22 = vpop.f32.mrb[35].mxu0  ;;  %v3311_v27 = vadd.f32 %v4107_v26, %v3305_v17 }
 0x6b6   : > { %v3313_v31 = vsel %vm601_vm2, %v3311_v27, 0.0  ;;  %v3312_v23 = vadd.f32 %v4108_v32, %v3308_v21 }
 0x6b7   : > { %3314 = vadd.xlane.f32.xlu0 %v3313_v31 }
 0x6b8   : > { %v3316_v30 = vsel %vm601_vm2, %v3312_v23, 0.0 }
 0x6b9   : > { %3317 = vadd.xlane.f32.xlu1 %v3316_v30 }
 0x744   : > { %v3315_v29 = vpop.xlane.xlu0 %3314 }
 0x745   : > { %v3320_v34 = vmul.f32 0.03125, %v3315_v29 }
 0x746   : > { %v3318_v40 = vpop.xlane.xlu1 %3317 }
 0x747   : > { %v3322_v41 = vsub.f32 %v3311_v27, %v3320_v34  ;;  %v3321_v43 = vmul.f32 0.03125, %v3318_v40  ;;  %v3754_v27 = vld [vmem:[%s5158_s28] ss:$0 sm:$0xff] }
 0x749   : > { %v3323_v18 = vsub.f32 %v3312_v23, %v3321_v43  ;;  %v3324_v25 = vmul.f32 %v3322_v41, %v3322_v41 }
 0x74b   : > { %v3326_v37 = vsel %vm601_vm2, %v3324_v25, 0.0  ;;  %v3325_v57 = vmul.f32 %v3323_v18, %v3323_v18 }
 0x74c   : > { %3327 = vadd.xlane.f32.xlu0 %v3326_v37 }
 0x74d   : > { %v3329_v7 = vsel %vm601_vm2, %v3325_v57, 0.0 }
 0x750   : > { %3330 = vadd.xlane.f32.xlu0 %v3329_v7 }
 0x7d9   : > { %v3328_v28 = vpop.xlane.xlu0 %3327 }
 0x7da   : > { %v3332_v46 = vmul.f32 0.03125, %v3328_v28 }
 0x7dc   : > { %v3334_v35 = vadd.f32 1e-05, %v3332_v46 }
 0x7dd   : > { %v3331_v33 = vpop.xlane.xlu0 %3330 }
 0x7de   : > { %4095 = vrsqrt.f32 %v3334_v35  ;;  %v3333_v51 = vmul.f32 0.03125, %v3331_v33 }
 0x7e0   : > { %v3335_v54 = vadd.f32 1e-05, %v3333_v51 }
 0x7e2   : > { %4097 = vrsqrt.f32 %v3335_v54 }
 0x7e8   : > { %v4096_v36 = vpop.eup %4095 }
 0x7e9   : > { %v3338_v44 = vmul.f32 %v4096_v36, %v3322_v41 }
 0x7eb   : > { %v3346_v55 = vmul.f32 %v5027_v49, %v3338_v44 }
 0x7ec   : > { %v4098_v52 = vpop.eup %4097 }
 0x7ed   : > { %v3339_v56 = vmul.f32 %v4098_v52, %v3323_v18  ;;  %v3354_v39 = vadd.f32 %v5033_v62, %v3346_v55 }
 0x7ef   : > { %v3347_v59 = vmul.f32 %v5027_v49, %v3339_v56 }
 0x7f1   : > { %v3355_v60 = vadd.f32 %v5033_v62, %v3347_v59 }
 0x7f3   : > { %v3356_v63 = vpack.c.bf16 %v3355_v60, %v3354_v39 }
 0x7f5   : > { %3944 = vmatmul.mubr.msk.bf16.vlgmr.msra.gmra.mrb[40].mxu1 %vm601_vm2, %v3356_v63 }
 0x8c8   : > { %v3417_v12 = vpop.f32.mrb[40].mxu1 }
 0x8c9   : > { %v3418_v53 = vadd.f32 %v3750_v11, %v3417_v12  ;;  %v3945_v13 = vpop.f32.mrb[41].mxu1 }
 0x8ca   : > { %v3420_v14 = vpop.f32.mrb[42].mxu1 }
 0x8cb   : > { %v3424_v38 = vmul.f32 %v3418_v53, %v3418_v53  ;;  %v3421_v5 = vadd.f32 %v3750_v11, %v3420_v14  ;;  %v3946_v15 = vpop.f32.mrb[43].mxu1 }
 0x8cd   : > { %v3426_v24 = vmul.f32 %v3424_v38, %v3418_v53  ;;  %v3425_v48 = vmul.f32 %v3421_v5, %v3421_v5 }
 0x8cf   : > { %v3428_v6 = vmul.f32 0.044715, %v3426_v24  ;;  %v3427_v3 = vmul.f32 %v3425_v48, %v3421_v5 }
 0x8d1   : > { %v3430_v61 = vadd.f32 %v3428_v6, %v3418_v53  ;;  %v3429_v47 = vmul.f32 0.044715, %v3427_v3 }
 0x8d3   : > { %v3432_v9 = vmul.f32 0.7978846, %v3430_v61  ;;  %v3431_v58 = vadd.f32 %v3429_v47, %v3421_v5 }
 0x8d5   : > { %4099 = vtanh.f32 %v3432_v9  ;;  %v3433_v16 = vmul.f32 0.7978846, %v3431_v58 }
 0x8d7   : > { %4101 = vtanh.f32 %v3433_v16 }
 0x8df   : > { %v4100_v42 = vpop.eup %4099 }
 0x8e0   : > { %v3436_v2 = vadd.f32 1.0, %v4100_v42 }
 0x8e1   : > { %v4102_v4 = vpop.eup %4101 }
 0x8e2   : > { %v3438_v17 = vmul.f32 0.5, %v3436_v2  ;;  %v3437_v19 = vadd.f32 1.0, %v4102_v4 }
 0x8e4   : > { %v3439_v20 = vmul.f32 0.5, %v3437_v19  ;;  %v3440_v21 = vmul.f32 %v3438_v17, %v3418_v53 }
 0x8e6   : > { %v3441_v22 = vmul.f32 %v3439_v20, %v3421_v5 }
 0x8e8   : > { %v3442_v26 = vpack.c.bf16 %v3441_v22, %v3440_v21 }
 0x8ea   : > { %3956 = vmatmul.mubr.msk.bf16.vlgmr.msra.gmra.mrb[36].mxu0 %vm3482_vm7, %v3442_v26 }
 0x9bd   : > { %v3520_v31 = vpop.f32.mrb[36].mxu0 }
 0x9be   : > { %v3521_v32 = vadd.f32 %v3754_v27, %v3520_v31  ;;  %v3957_v23 = vpop.f32.mrb[37].mxu0 }
 0x9bf   : > { %v3523_v30 = vpop.f32.mrb[38].mxu0 }
 0x9c0   : > { %v3524_v29 = vadd.f32 %v3754_v27, %v3523_v30  ;;  %v3958_v34 = vpop.f32.mrb[39].mxu0  ;;  %v3527_v40 = vadd.f32 %v3521_v32, %v3354_v39 }
 0x9c2   : > { %v3529_v41 = vsel %vm601_vm2, %v3527_v40, 0.0  ;;  %v3528_v43 = vadd.f32 %v3524_v29, %v3355_v60 }
 0x9c3   : > { %3530 = vadd.xlane.f32.xlu1 %v3529_v41 }
 0x9c4   : > { %v3532_v18 = vsel %vm601_vm2, %v3528_v43, 0.0 }
 0x9c5   : > { %3533 = vadd.xlane.f32.xlu0 %v3532_v18 }
 0xa50   : > { %v3531_v25 = vpop.xlane.xlu1 %3530 }
 0xa51   : > { %v3535_v37 = vmul.f32 0.03125, %v3531_v25 }
 0xa52   : > { %v3534_v57 = vpop.xlane.xlu0 %3533 }
 0xa53   : > { %v3537_v7 = vsub.f32 %v3527_v40, %v3535_v37  ;;  %v3536_v45 = vmul.f32 0.03125, %v3534_v57 }
 0xa55   : > { %v3538_v50 = vsub.f32 %v3528_v43, %v3536_v45  ;;  %v3539_v28 = vmul.f32 %v3537_v7, %v3537_v7 }
 0xa57   : > { %v3541_v46 = vsel %vm601_vm2, %v3539_v28, 0.0  ;;  %v3540_v35 = vmul.f32 %v3538_v50, %v3538_v50 }
 0xa58   : > { %3542 = vadd.xlane.f32.xlu1 %v3541_v46 }
 0xa59   : > { %v3544_v33 = vsel %vm601_vm2, %v3540_v35, 0.0 }
 0xa5a   : > { %3545 = vadd.xlane.f32.xlu0 %v3544_v33 }
 0xae5   : > { %v3543_v51 = vpop.xlane.xlu1 %3542 }
 0xae6   : > { %v3547_v54 = vmul.f32 0.03125, %v3543_v51 }
 0xae7   : > { %v3546_v36 = vpop.xlane.xlu0 %3545 }
 0xae8   : > { %v3549_v44 = vadd.f32 1e-05, %v3547_v54  ;;  %v3548_v52 = vmul.f32 0.03125, %v3546_v36 }
 0xaea   : > { %4103 = vrsqrt.f32 %v3549_v44  ;;  %v3550_v55 = vadd.f32 1e-05, %v3548_v52 }
 0xaec   : > { %4105 = vrsqrt.f32 %v3550_v55 }
 0xaf4   : > { %v4104_v56 = vpop.eup %4103 }
 0xaf5   : > { %v3553_v59 = vmul.f32 %v4104_v56, %v3537_v7 }
 0xaf6   : > { %v4106_v39 = vpop.eup %4105 }
 0xaf7   : > { %v3555_v60 = vmul.f32 %v5027_v49, %v3553_v59  ;;  %v3554_v63 = vmul.f32 %v4106_v39, %v3538_v50  ;;  %3564 = sbr.rel (%p3760_p10) target bundleno = 2814 (0xafe), region = 100 }
 0xaf9   : > { %v3557_v0 = vadd.f32 %v5033_v62, %v3555_v60  ;;  %v3556_v1 = vmul.f32 %v5027_v49, %v3554_v63 }
 0xafb   : > { %3559 = vst.msk [vmem:[#allocation2] sm:$0xff] %vm601_vm2, %v3557_v0  ;;  %v3558_v8 = vadd.f32 %v5033_v62, %v3556_v1  ;;  %3565 = vst.msk [vmem:[#allocation11] sm:$0xff] (!%p3760_p10), %vm601_vm2, %v3557_v0 }
 0xafd   : > { %3560 = vst.msk [vmem:[#allocation2 + $0x8] sm:$0xff] %vm601_vm2, %v3558_v8  ;;  %3566 = vst.msk [vmem:[#allocation11 + $0x8] sm:$0xff] (!%p3760_p10), %vm601_vm2, %v3558_v8 }
 0xafe PF: > { %s5159_s25 = sld [smem:[#allocation17_spill]]  ;;  %s4307_s30 = smov [#allocation11]  }
 0xaff   : > { %s3576_s2 = sshll.u32 %s4307_s30, 4  ;;  %s3577_s2 = int_to_ptr.vmem [resolvable:$true] %s3576_s2 }
 0xb00   : > { %s4221_s22 = scalar_lea.vmem %s3577_s2, 256  ;;  %p4228_p0 = scmp.lt.s32.totalorder %s3577_s2, %s3577_s2 }
 0xb01   : > { %p4222_p12 = scmp.ne.s32.totalorder %s3577_s2, %s4221_s22  ;;  %p4229_p1 = scmp.lt.s32.totalorder %s4221_s22, %s4221_s22 }
 0xb03   : > { %p4230_p4 = por %p4229_p1, %p4228_p0 }
 0xb04   : > { %s5160_s19 = sadd.s32 4294967295, %s5159_s25  }
 0xb05   : > { %p5075_p11 = scmp.eq.s32.totalorder %s5160_s19, 1 }
 0xb07   : > { %p4223_p13 = pnand %p4222_p12, %p5075_p11 }
 0xb09   : > { %p4224_p6 = pneg %p4223_p13 }
 0xb0b   : > { %p4231_p7 = pnand %p4230_p4, %p4224_p6 }
 0xb0d   : > { %4234 = shalt.err (!%p4231_p7)
}
 0xb0e   : > { %s5162_s9 = sld [smem:[#allocation23_spill]] }
 0xb14   : > { %s4235_s10 = scalar_lea.hbm %s5162_s9, 256 }
 0xb15   : > { %p4236_p9 = scmp.ne.s32.totalorder %s5162_s9, %s4235_s10  ;;  %p4241_p5 = scmp.lt.u32.totalorder %s4235_s10, %s5162_s9 }
 0xb17   : > { %p4237_p3 = pnand %p4236_p9, %p5075_p11 }
 0xb19   : > { %p4238_p8 = pneg %p4237_p3 }
 0xb1b   : > { %p4243_p2 = pnand %p4241_p5, %p4238_p8 }
 0xb1d   : > { %4246 = shalt.err (!%p4243_p2)
}
 0xb1e   : > { %s4308_s26 = smov 128  }
 0xb1f   : > { %3976 = dma.vmem_to_hbm [thread:$0]  (%p5075_p11), %s3577_s2, 256, %s5162_s9, [#allocation5], %s4308_s26, %s4308_s26, %s4305_s14  }
 0xb20   : > { %4272 = dma.done.wait (%p5075_p11), [#allocation5], 256  }
 0xb21   : > { %4274 = vsyncadd (%p5075_p11), [#allocation5], 4294967040 }
 0xb22 PF: > { %s5163_s21 = sld [smem:[#allocation17_spill]]  ;;  %s5164_s29 = sld [smem:[#allocation16_spill]] }
 0xb23   : > { %s5165_s30 = sld [smem:[#allocation18_spill]] }
 0xb28   : > { %s28_s15 = sadd.s32 1, %s5163_s21  }
 0xb29   : > { %p25_p10 = scmp.ge.s32.totalorder %s28_s15, 4  }
 0xb2b   :  { %27 = sbr.rel (!%p25_p10) target bundleno = 11 (0xb), region = 130 }
 0xb32   :  { %3592 = vsyncpa [#allocation4], 1 }
 0xb33   :  { %3594 = vsyncpa [#allocation4 + $0x1], 1 }
 0xb34   :  { %3595 = vsyncpa [#allocation7], 1 }
 0xb35   :  { %3596 = vsyncpa [#allocation10], 1 }
 0xb36   :  { %3597 = vsyncpa [#allocation5], 1 }
 0xb37   :  { %3599 = vsyncpa [#allocation5 + $0x1], 1 }

</bundles_post_ra>
